<compile_context>
chip_gen: v6e
topology: v6e:2x2x1
jax: 0.10.0
libtpu: 0.0.40
codegen_flags: <defaults>
</compile_context>

<pallas_src>
import functools

import jax
import jax.numpy as jnp
from jax.experimental import pallas as pl
from jax.experimental.pallas import tpu as pltpu


def _raster_kernel(geom_ref, img_ref, zbuf_ref, *, num_faces, width):
    """Rasterize `num_faces` triangles into one lane-dense pixel tile.

    geom_ref: SMEM (F*18,) per-face:
              [A0,B0,C0, A1,B1,C1, zc,dz0,dz1, rc,dr0,dr1, gc,dg0,dg1, bc,db0,db1]
    img_ref : VMEM (4, TS, 128)  output tile (R, G, B, A) over flattened pixels
    zbuf_ref: VMEM (TS, 128)     output tile (nearest-face depth, -1 if empty)
    """
    TS, L = zbuf_ref.shape  # L == 128 (full lanes)

    # Flat pixel index -> (px, py) pixel coordinates (computed once per tile).
    base = pl.program_id(0) * (TS * L)
    flat = (base
            + jax.lax.broadcasted_iota(jnp.int32, (TS, L), 0) * L
            + jax.lax.broadcasted_iota(jnp.int32, (TS, L), 1))
    if (width & (width - 1)) == 0:  # power-of-two width: shift/mask
        shift = width.bit_length() - 1
        py_i = flat >> shift
        px_i = flat & (width - 1)
    else:
        py_i = flat // width
        px_i = flat - py_i * width
    px = px_i.astype(jnp.float32)
    py = py_i.astype(jnp.float32)

    one = jnp.float32(1.0)
    zero = jnp.float32(0.0)

    zbuf = jnp.full((TS, L), jnp.inf, dtype=jnp.float32)
    # hard_rgb_blend default background color is (1, 1, 1).
    r = jnp.ones((TS, L), dtype=jnp.float32)
    g = jnp.ones((TS, L), dtype=jnp.float32)
    b = jnp.ones((TS, L), dtype=jnp.float32)

    for f in range(num_faces):  # static unroll; face count is small here
        o = f * 18
        # Affine barycentrics (inv signed area folded in host-side).
        l0 = geom_ref[o + 0] * px + geom_ref[o + 1] * py + geom_ref[o + 2]
        l1 = geom_ref[o + 3] * px + geom_ref[o + 4] * py + geom_ref[o + 5]
        # Depth in delta form; faces_per_pixel=1 -> keep nearest face only.
        z = geom_ref[o + 6] + l0 * geom_ref[o + 7] + l1 * geom_ref[o + 8]
        # Inside-test without materializing l2: l2 >= 0 <=> l0 + l1 <= 1.
        hit = (jnp.minimum(l0, l1) >= zero) & (l0 + l1 <= one) & (z < zbuf)
        # Interpolated vertex colors (delta form, base = vertex 2).
        cr = geom_ref[o + 9] + l0 * geom_ref[o + 10] + l1 * geom_ref[o + 11]
        cg = geom_ref[o + 12] + l0 * geom_ref[o + 13] + l1 * geom_ref[o + 14]
        cb = geom_ref[o + 15] + l0 * geom_ref[o + 16] + l1 * geom_ref[o + 17]

        zbuf = jnp.where(hit, z, zbuf)
        r = jnp.where(hit, cr, r)
        g = jnp.where(hit, cg, g)
        b = jnp.where(hit, cb, b)

    img_ref[0] = r
    img_ref[1] = g
    img_ref[2] = b
    # hard_rgb_blend returns alpha = 1 everywhere.
    img_ref[3] = jnp.ones((TS, L), dtype=jnp.float32)
    zbuf_ref[...] = jnp.where(zbuf < jnp.float32(1e30), zbuf, jnp.float32(-1.0))


def visualizer_forward(verts, faces, vert_colors, configs):
    """Equivalent of Visualizer.forward(mesh) -> (image, depth)."""
    H = int(configs["bev_x_length"] / configs["bev_resolution"])
    W = int(configs["bev_y_length"] / configs["bev_resolution"])
    num_px = H * W
    assert num_px % 128 == 0, "H*W must be a multiple of 128 for lane-dense tiles"

    cx = configs["bev_x_length"] / 2.0
    cy = configs["bev_y_length"] / 2.0
    R = jnp.array([[0.0, 1.0, 0.0],
                   [1.0, 0.0, 0.0],
                   [0.0, 0.0, -1.0]], dtype=jnp.float32)
    T = jnp.array([-cx, -cy, 10.0], dtype=jnp.float32)
    fx = jnp.float32(1.0 / cx)
    fy = jnp.float32(1.0 / cy)

    # PyTorch3D transform convention: X_cam = X_world @ R + T (row vectors).
    verts_cam = verts.astype(jnp.float32) @ R + T
    x_ndc = verts_cam[:, 0] * fx
    y_ndc = verts_cam[:, 1] * fy
    z_cam = verts_cam[:, 2]

    # NDC (+x left, +y up in PyTorch3D) -> pixel-center coordinates.
    px = (1.0 - x_ndc) * (0.5 * W) - 0.5
    py = (1.0 - y_ndc) * (0.5 * H) - 0.5

    tri_px = px[faces]          # (F, 3)
    tri_py = py[faces]          # (F, 3)
    tri_z = z_cam[faces]        # (F, 3)
    cols = vert_colors.astype(jnp.float32)[faces]  # (F, 3, 3)

    x0, x1, x2 = tri_px[:, 0], tri_px[:, 1], tri_px[:, 2]
    y0, y1, y2 = tri_py[:, 0], tri_py[:, 1], tri_py[:, 2]
    area = (x1 - x0) * (y2 - y0) - (y1 - y0) * (x2 - x0)
    valid = jnp.abs(area) > 1e-8
    inv_area = jnp.where(valid, 1.0 / jnp.where(valid, area, 1.0), 0.0)

    # Affine edge coefficients with signed-area normalization folded in:
    #   l0 = A0*px + B0*py + C0,  l1 = A1*px + B1*py + C1,  l2 = 1 - l0 - l1
    A0 = (y1 - y2) * inv_area
    B0 = (x2 - x1) * inv_area
    C0 = (x1 * y2 - x2 * y1) * inv_area
    A1 = (y2 - y0) * inv_area
    B1 = (x0 - x2) * inv_area
    C1 = (x2 * y0 - x0 * y2) * inv_area

    # Bake degenerate-face rejection into the coefficients (l0 = -1 always).
    A0 = jnp.where(valid, A0, 0.0)
    B0 = jnp.where(valid, B0, 0.0)
    C0 = jnp.where(valid, C0, -1.0)
    A1 = jnp.where(valid, A1, 0.0)
    B1 = jnp.where(valid, B1, 0.0)
    C1 = jnp.where(valid, C1, 0.0)

    z0, z1, z2 = tri_z[:, 0], tri_z[:, 1], tri_z[:, 2]
    r0, r1, r2 = cols[:, 0, 0], cols[:, 1, 0], cols[:, 2, 0]
    g0, g1, g2 = cols[:, 0, 1], cols[:, 1, 1], cols[:, 2, 1]
    b0, b1, b2 = cols[:, 0, 2], cols[:, 1, 2], cols[:, 2, 2]

    geom = jnp.stack(
        [A0, B0, C0,
         A1, B1, C1,
         z2, z0 - z2, z1 - z2,
         r2, r0 - r2, r1 - r2,
         g2, g0 - g2, g1 - g2,
         b2, b0 - b2, b1 - b2], axis=-1).reshape(-1).astype(jnp.float32)  # (F*18,)

    num_faces = int(faces.shape[0])

    # Lane-dense flattened layout: (H*W/128, 128) rows of pixels.
    nrows = num_px // 128
    # grid=(2,) keeps v7x's two TensorCores busy; on v5e/v6e it's 2 cheap
    # serial steps (accumulators stay in vregs within each step).
    num_tiles = 2 if (nrows % 16 == 0 and nrows >= 16) else 1
    ts = nrows // num_tiles

    img_slab, zbuf_slab = pl.pallas_call(
        functools.partial(_raster_kernel, num_faces=num_faces, width=W),
        out_shape=(jax.ShapeDtypeStruct((4, nrows, 128), jnp.float32),
                   jax.ShapeDtypeStruct((nrows, 128), jnp.float32)),
        grid=(num_tiles,),
        in_specs=[pl.BlockSpec(memory_space=pltpu.MemorySpace.SMEM)],
        out_specs=(pl.BlockSpec((4, ts, 128), lambda i: (0, i, 0)),
                   pl.BlockSpec((ts, 128), lambda i: (i, 0))),
        compiler_params=pltpu.CompilerParams(
            dimension_semantics=("parallel",)),
    )(geom)

    # Reshape flattened slab back to (H, W); kernel keeps W minor so XLA can
    # fuse the NHWC transpose with downstream consumers.
    image = jnp.transpose(img_slab.reshape(4, H, W), (1, 2, 0))[None]  # (1,H,W,4)
    depth = zbuf_slab.reshape(H, W)[None, :, :, None]                  # (1,H,W,1)
    return image, depth


if __name__ == "__main__":
    configs = {
        "bev_x_length": 16.0,
        "bev_y_length": 16.0,
        "bev_resolution": 0.25,   # -> 64 x 64 image
        "input_sfm": "",
    }

    key = jax.random.PRNGKey(0)
    k_xy, k_z, k_col, k_face = jax.random.split(key, 4)

    num_verts, num_faces = 12, 8
    verts_xy = jax.random.uniform(k_xy, (num_verts, 2), jnp.float32,
                                  minval=0.0, maxval=configs["bev_x_length"])
    verts_z = jax.random.uniform(k_z, (num_verts, 1), jnp.float32,
                                 minval=0.0, maxval=5.0)
    verts = jnp.concatenate([verts_xy, verts_z], axis=-1)                 # (V, 3)
    vert_colors = jax.random.uniform(k_col, (num_verts, 3), jnp.float32)  # (V, 3)
    faces = jax.random.randint(k_face, (num_faces, 3), 0, num_verts,
                               dtype=jnp.int32)                           # (F, 3)

    image, depth = visualizer_forward(verts, faces, vert_colors, configs)
    jax.block_until_ready((image, depth))

    assert image.shape == (1, 64, 64, 4) and image.dtype == jnp.float32
    assert depth.shape == (1, 64, 64, 1) and depth.dtype == jnp.float32
    print("KERNEL_OK")
</pallas_src>

<mosaic_0001>
module attributes {stable_mosaic.version = 11 : i64} {
  func.func @_raster_kernel(%arg0: i32, %arg1: memref<144xf32, #tpu.memory_space<smem>>, %arg2: memref<4x16x128xf32, #tpu.memory_space<vmem>>, %arg3: memref<16x128xf32, #tpu.memory_space<vmem>>) attributes {dimension_semantics = [#tpu.dimension_semantics<parallel>], iteration_bounds = array<i64: 2>, scalar_prefetch = 0 : i64, scratch_operands = 0 : i64, tpu.core_type = #tpu.core_type<tc>, window_params = [{transform_indices = @transform_0, window_bounds = array<i64: 144>}, {transform_indices = @transform_1, window_bounds = array<i64: 4, 16, 128>}, {transform_indices = @transform_2, window_bounds = array<i64: 16, 128>}]} {
    %c2048_i32 = arith.constant 2048 : i32
    %0 = arith.muli %arg0, %c2048_i32 : i32
    %1 = tpu.iota {dimensions = array<i32: 0>} : vector<16x128xi32>
    %c128_i32 = arith.constant 128 : i32
    %2 = vector.broadcast %c128_i32 : i32 to vector<16x128xi32>
    %3 = arith.muli %1, %2 : vector<16x128xi32>
    %4 = vector.broadcast %0 : i32 to vector<16x128xi32>
    %5 = arith.addi %4, %3 : vector<16x128xi32>
    %6 = tpu.iota {dimensions = array<i32: 1>} : vector<16x128xi32>
    %7 = arith.addi %5, %6 : vector<16x128xi32>
    %c6_i32 = arith.constant 6 : i32
    %8 = vector.broadcast %c6_i32 : i32 to vector<16x128xi32>
    %9 = arith.shrsi %7, %8 : vector<16x128xi32>
    %c63_i32 = arith.constant 63 : i32
    %10 = vector.broadcast %c63_i32 : i32 to vector<16x128xi32>
    %11 = arith.andi %7, %10 : vector<16x128xi32>
    %12 = arith.sitofp %11 : vector<16x128xi32> to vector<16x128xf32>
    %13 = arith.sitofp %9 : vector<16x128xi32> to vector<16x128xf32>
    %cst = arith.constant 0x7F800000 : f32
    %14 = vector.broadcast %cst : f32 to vector<16x128xf32>
    %cst_0 = arith.constant 1.000000e+00 : f32
    %15 = vector.broadcast %cst_0 : f32 to vector<16x128xf32>
    %cst_1 = arith.constant 1.000000e+00 : f32
    %16 = vector.broadcast %cst_1 : f32 to vector<16x128xf32>
    %cst_2 = arith.constant 1.000000e+00 : f32
    %17 = vector.broadcast %cst_2 : f32 to vector<16x128xf32>
    %c0 = arith.constant 0 : index
    %18 = memref.load %arg1[%c0] : memref<144xf32, #tpu.memory_space<smem>>
    %19 = vector.broadcast %18 : f32 to vector<16x128xf32>
    %20 = arith.mulf %19, %12 : vector<16x128xf32>
    %c1 = arith.constant 1 : index
    %21 = memref.load %arg1[%c1] : memref<144xf32, #tpu.memory_space<smem>>
    %22 = vector.broadcast %21 : f32 to vector<16x128xf32>
    %23 = arith.mulf %22, %13 : vector<16x128xf32>
    %24 = arith.addf %20, %23 : vector<16x128xf32>
    %c2 = arith.constant 2 : index
    %25 = memref.load %arg1[%c2] : memref<144xf32, #tpu.memory_space<smem>>
    %26 = vector.broadcast %25 : f32 to vector<16x128xf32>
    %27 = arith.addf %24, %26 : vector<16x128xf32>
    %c3 = arith.constant 3 : index
    %28 = memref.load %arg1[%c3] : memref<144xf32, #tpu.memory_space<smem>>
    %29 = vector.broadcast %28 : f32 to vector<16x128xf32>
    %30 = arith.mulf %29, %12 : vector<16x128xf32>
    %c4 = arith.constant 4 : index
    %31 = memref.load %arg1[%c4] : memref<144xf32, #tpu.memory_space<smem>>
    %32 = vector.broadcast %31 : f32 to vector<16x128xf32>
    %33 = arith.mulf %32, %13 : vector<16x128xf32>
    %34 = arith.addf %30, %33 : vector<16x128xf32>
    %c5 = arith.constant 5 : index
    %35 = memref.load %arg1[%c5] : memref<144xf32, #tpu.memory_space<smem>>
    %36 = vector.broadcast %35 : f32 to vector<16x128xf32>
    %37 = arith.addf %34, %36 : vector<16x128xf32>
    %c6 = arith.constant 6 : index
    %38 = memref.load %arg1[%c6] : memref<144xf32, #tpu.memory_space<smem>>
    %c7 = arith.constant 7 : index
    %39 = memref.load %arg1[%c7] : memref<144xf32, #tpu.memory_space<smem>>
    %40 = vector.broadcast %39 : f32 to vector<16x128xf32>
    %41 = arith.mulf %27, %40 : vector<16x128xf32>
    %42 = vector.broadcast %38 : f32 to vector<16x128xf32>
    %43 = arith.addf %42, %41 : vector<16x128xf32>
    %c8 = arith.constant 8 : index
    %44 = memref.load %arg1[%c8] : memref<144xf32, #tpu.memory_space<smem>>
    %45 = vector.broadcast %44 : f32 to vector<16x128xf32>
    %46 = arith.mulf %37, %45 : vector<16x128xf32>
    %47 = arith.addf %43, %46 : vector<16x128xf32>
    %48 = arith.minimumf %27, %37 : vector<16x128xf32>
    %cst_3 = arith.constant 0.000000e+00 : f32
    %49 = vector.broadcast %cst_3 : f32 to vector<16x128xf32>
    %50 = arith.cmpf oge, %48, %49 : vector<16x128xf32>
    %51 = arith.addf %27, %37 : vector<16x128xf32>
    %cst_4 = arith.constant 1.000000e+00 : f32
    %52 = vector.broadcast %cst_4 : f32 to vector<16x128xf32>
    %53 = arith.cmpf ole, %51, %52 : vector<16x128xf32>
    %54 = arith.andi %50, %53 : vector<16x128xi1>
    %55 = arith.cmpf olt, %47, %14 : vector<16x128xf32>
    %56 = arith.andi %54, %55 : vector<16x128xi1>
    %c9 = arith.constant 9 : index
    %57 = memref.load %arg1[%c9] : memref<144xf32, #tpu.memory_space<smem>>
    %c10 = arith.constant 10 : index
    %58 = memref.load %arg1[%c10] : memref<144xf32, #tpu.memory_space<smem>>
    %59 = vector.broadcast %58 : f32 to vector<16x128xf32>
    %60 = arith.mulf %27, %59 : vector<16x128xf32>
    %61 = vector.broadcast %57 : f32 to vector<16x128xf32>
    %62 = arith.addf %61, %60 : vector<16x128xf32>
    %c11 = arith.constant 11 : index
    %63 = memref.load %arg1[%c11] : memref<144xf32, #tpu.memory_space<smem>>
    %64 = vector.broadcast %63 : f32 to vector<16x128xf32>
    %65 = arith.mulf %37, %64 : vector<16x128xf32>
    %66 = arith.addf %62, %65 : vector<16x128xf32>
    %c12 = arith.constant 12 : index
    %67 = memref.load %arg1[%c12] : memref<144xf32, #tpu.memory_space<smem>>
    %c13 = arith.constant 13 : index
    %68 = memref.load %arg1[%c13] : memref<144xf32, #tpu.memory_space<smem>>
    %69 = vector.broadcast %68 : f32 to vector<16x128xf32>
    %70 = arith.mulf %27, %69 : vector<16x128xf32>
    %71 = vector.broadcast %67 : f32 to vector<16x128xf32>
    %72 = arith.addf %71, %70 : vector<16x128xf32>
    %c14 = arith.constant 14 : index
    %73 = memref.load %arg1[%c14] : memref<144xf32, #tpu.memory_space<smem>>
    %74 = vector.broadcast %73 : f32 to vector<16x128xf32>
    %75 = arith.mulf %37, %74 : vector<16x128xf32>
    %76 = arith.addf %72, %75 : vector<16x128xf32>
    %c15 = arith.constant 15 : index
    %77 = memref.load %arg1[%c15] : memref<144xf32, #tpu.memory_space<smem>>
    %c16 = arith.constant 16 : index
    %78 = memref.load %arg1[%c16] : memref<144xf32, #tpu.memory_space<smem>>
    %79 = vector.broadcast %78 : f32 to vector<16x128xf32>
    %80 = arith.mulf %27, %79 : vector<16x128xf32>
    %81 = vector.broadcast %77 : f32 to vector<16x128xf32>
    %82 = arith.addf %81, %80 : vector<16x128xf32>
    %c17 = arith.constant 17 : index
    %83 = memref.load %arg1[%c17] : memref<144xf32, #tpu.memory_space<smem>>
    %84 = vector.broadcast %83 : f32 to vector<16x128xf32>
    %85 = arith.mulf %37, %84 : vector<16x128xf32>
    %86 = arith.addf %82, %85 : vector<16x128xf32>
    %87 = arith.select %56, %47, %14 : vector<16x128xi1>, vector<16x128xf32>
    %88 = arith.select %56, %66, %15 : vector<16x128xi1>, vector<16x128xf32>
    %89 = arith.select %56, %76, %16 : vector<16x128xi1>, vector<16x128xf32>
    %90 = arith.select %56, %86, %17 : vector<16x128xi1>, vector<16x128xf32>
    %c18 = arith.constant 18 : index
    %91 = memref.load %arg1[%c18] : memref<144xf32, #tpu.memory_space<smem>>
    %92 = vector.broadcast %91 : f32 to vector<16x128xf32>
    %93 = arith.mulf %92, %12 : vector<16x128xf32>
    %c19 = arith.constant 19 : index
    %94 = memref.load %arg1[%c19] : memref<144xf32, #tpu.memory_space<smem>>
    %95 = vector.broadcast %94 : f32 to vector<16x128xf32>
    %96 = arith.mulf %95, %13 : vector<16x128xf32>
    %97 = arith.addf %93, %96 : vector<16x128xf32>
    %c20 = arith.constant 20 : index
    %98 = memref.load %arg1[%c20] : memref<144xf32, #tpu.memory_space<smem>>
    %99 = vector.broadcast %98 : f32 to vector<16x128xf32>
    %100 = arith.addf %97, %99 : vector<16x128xf32>
    %c21 = arith.constant 21 : index
    %101 = memref.load %arg1[%c21] : memref<144xf32, #tpu.memory_space<smem>>
    %102 = vector.broadcast %101 : f32 to vector<16x128xf32>
    %103 = arith.mulf %102, %12 : vector<16x128xf32>
    %c22 = arith.constant 22 : index
    %104 = memref.load %arg1[%c22] : memref<144xf32, #tpu.memory_space<smem>>
    %105 = vector.broadcast %104 : f32 to vector<16x128xf32>
    %106 = arith.mulf %105, %13 : vector<16x128xf32>
    %107 = arith.addf %103, %106 : vector<16x128xf32>
    %c23 = arith.constant 23 : index
    %108 = memref.load %arg1[%c23] : memref<144xf32, #tpu.memory_space<smem>>
    %109 = vector.broadcast %108 : f32 to vector<16x128xf32>
    %110 = arith.addf %107, %109 : vector<16x128xf32>
    %c24 = arith.constant 24 : index
    %111 = memref.load %arg1[%c24] : memref<144xf32, #tpu.memory_space<smem>>
    %c25 = arith.constant 25 : index
    %112 = memref.load %arg1[%c25] : memref<144xf32, #tpu.memory_space<smem>>
    %113 = vector.broadcast %112 : f32 to vector<16x128xf32>
    %114 = arith.mulf %100, %113 : vector<16x128xf32>
    %115 = vector.broadcast %111 : f32 to vector<16x128xf32>
    %116 = arith.addf %115, %114 : vector<16x128xf32>
    %c26 = arith.constant 26 : index
    %117 = memref.load %arg1[%c26] : memref<144xf32, #tpu.memory_space<smem>>
    %118 = vector.broadcast %117 : f32 to vector<16x128xf32>
    %119 = arith.mulf %110, %118 : vector<16x128xf32>
    %120 = arith.addf %116, %119 : vector<16x128xf32>
    %121 = arith.minimumf %100, %110 : vector<16x128xf32>
    %cst_5 = arith.constant 0.000000e+00 : f32
    %122 = vector.broadcast %cst_5 : f32 to vector<16x128xf32>
    %123 = arith.cmpf oge, %121, %122 : vector<16x128xf32>
    %124 = arith.addf %100, %110 : vector<16x128xf32>
    %cst_6 = arith.constant 1.000000e+00 : f32
    %125 = vector.broadcast %cst_6 : f32 to vector<16x128xf32>
    %126 = arith.cmpf ole, %124, %125 : vector<16x128xf32>
    %127 = arith.andi %123, %126 : vector<16x128xi1>
    %128 = arith.cmpf olt, %120, %87 : vector<16x128xf32>
    %129 = arith.andi %127, %128 : vector<16x128xi1>
    %c27 = arith.constant 27 : index
    %130 = memref.load %arg1[%c27] : memref<144xf32, #tpu.memory_space<smem>>
    %c28 = arith.constant 28 : index
    %131 = memref.load %arg1[%c28] : memref<144xf32, #tpu.memory_space<smem>>
    %132 = vector.broadcast %131 : f32 to vector<16x128xf32>
    %133 = arith.mulf %100, %132 : vector<16x128xf32>
    %134 = vector.broadcast %130 : f32 to vector<16x128xf32>
    %135 = arith.addf %134, %133 : vector<16x128xf32>
    %c29 = arith.constant 29 : index
    %136 = memref.load %arg1[%c29] : memref<144xf32, #tpu.memory_space<smem>>
    %137 = vector.broadcast %136 : f32 to vector<16x128xf32>
    %138 = arith.mulf %110, %137 : vector<16x128xf32>
    %139 = arith.addf %135, %138 : vector<16x128xf32>
    %c30 = arith.constant 30 : index
    %140 = memref.load %arg1[%c30] : memref<144xf32, #tpu.memory_space<smem>>
    %c31 = arith.constant 31 : index
    %141 = memref.load %arg1[%c31] : memref<144xf32, #tpu.memory_space<smem>>
    %142 = vector.broadcast %141 : f32 to vector<16x128xf32>
    %143 = arith.mulf %100, %142 : vector<16x128xf32>
    %144 = vector.broadcast %140 : f32 to vector<16x128xf32>
    %145 = arith.addf %144, %143 : vector<16x128xf32>
    %c32 = arith.constant 32 : index
    %146 = memref.load %arg1[%c32] : memref<144xf32, #tpu.memory_space<smem>>
    %147 = vector.broadcast %146 : f32 to vector<16x128xf32>
    %148 = arith.mulf %110, %147 : vector<16x128xf32>
    %149 = arith.addf %145, %148 : vector<16x128xf32>
    %c33 = arith.constant 33 : index
    %150 = memref.load %arg1[%c33] : memref<144xf32, #tpu.memory_space<smem>>
    %c34 = arith.constant 34 : index
    %151 = memref.load %arg1[%c34] : memref<144xf32, #tpu.memory_space<smem>>
    %152 = vector.broadcast %151 : f32 to vector<16x128xf32>
    %153 = arith.mulf %100, %152 : vector<16x128xf32>
    %154 = vector.broadcast %150 : f32 to vector<16x128xf32>
    %155 = arith.addf %154, %153 : vector<16x128xf32>
    %c35 = arith.constant 35 : index
    %156 = memref.load %arg1[%c35] : memref<144xf32, #tpu.memory_space<smem>>
    %157 = vector.broadcast %156 : f32 to vector<16x128xf32>
    %158 = arith.mulf %110, %157 : vector<16x128xf32>
    %159 = arith.addf %155, %158 : vector<16x128xf32>
    %160 = arith.select %129, %120, %87 : vector<16x128xi1>, vector<16x128xf32>
    %161 = arith.select %129, %139, %88 : vector<16x128xi1>, vector<16x128xf32>
    %162 = arith.select %129, %149, %89 : vector<16x128xi1>, vector<16x128xf32>
    %163 = arith.select %129, %159, %90 : vector<16x128xi1>, vector<16x128xf32>
    %c36 = arith.constant 36 : index
    %164 = memref.load %arg1[%c36] : memref<144xf32, #tpu.memory_space<smem>>
    %165 = vector.broadcast %164 : f32 to vector<16x128xf32>
    %166 = arith.mulf %165, %12 : vector<16x128xf32>
    %c37 = arith.constant 37 : index
    %167 = memref.load %arg1[%c37] : memref<144xf32, #tpu.memory_space<smem>>
    %168 = vector.broadcast %167 : f32 to vector<16x128xf32>
    %169 = arith.mulf %168, %13 : vector<16x128xf32>
    %170 = arith.addf %166, %169 : vector<16x128xf32>
    %c38 = arith.constant 38 : index
    %171 = memref.load %arg1[%c38] : memref<144xf32, #tpu.memory_space<smem>>
    %172 = vector.broadcast %171 : f32 to vector<16x128xf32>
    %173 = arith.addf %170, %172 : vector<16x128xf32>
    %c39 = arith.constant 39 : index
    %174 = memref.load %arg1[%c39] : memref<144xf32, #tpu.memory_space<smem>>
    %175 = vector.broadcast %174 : f32 to vector<16x128xf32>
    %176 = arith.mulf %175, %12 : vector<16x128xf32>
    %c40 = arith.constant 40 : index
    %177 = memref.load %arg1[%c40] : memref<144xf32, #tpu.memory_space<smem>>
    %178 = vector.broadcast %177 : f32 to vector<16x128xf32>
    %179 = arith.mulf %178, %13 : vector<16x128xf32>
    %180 = arith.addf %176, %179 : vector<16x128xf32>
    %c41 = arith.constant 41 : index
    %181 = memref.load %arg1[%c41] : memref<144xf32, #tpu.memory_space<smem>>
    %182 = vector.broadcast %181 : f32 to vector<16x128xf32>
    %183 = arith.addf %180, %182 : vector<16x128xf32>
    %c42 = arith.constant 42 : index
    %184 = memref.load %arg1[%c42] : memref<144xf32, #tpu.memory_space<smem>>
    %c43 = arith.constant 43 : index
    %185 = memref.load %arg1[%c43] : memref<144xf32, #tpu.memory_space<smem>>
    %186 = vector.broadcast %185 : f32 to vector<16x128xf32>
    %187 = arith.mulf %173, %186 : vector<16x128xf32>
    %188 = vector.broadcast %184 : f32 to vector<16x128xf32>
    %189 = arith.addf %188, %187 : vector<16x128xf32>
    %c44 = arith.constant 44 : index
    %190 = memref.load %arg1[%c44] : memref<144xf32, #tpu.memory_space<smem>>
    %191 = vector.broadcast %190 : f32 to vector<16x128xf32>
    %192 = arith.mulf %183, %191 : vector<16x128xf32>
    %193 = arith.addf %189, %192 : vector<16x128xf32>
    %194 = arith.minimumf %173, %183 : vector<16x128xf32>
    %cst_7 = arith.constant 0.000000e+00 : f32
    %195 = vector.broadcast %cst_7 : f32 to vector<16x128xf32>
    %196 = arith.cmpf oge, %194, %195 : vector<16x128xf32>
    %197 = arith.addf %173, %183 : vector<16x128xf32>
    %cst_8 = arith.constant 1.000000e+00 : f32
    %198 = vector.broadcast %cst_8 : f32 to vector<16x128xf32>
    %199 = arith.cmpf ole, %197, %198 : vector<16x128xf32>
    %200 = arith.andi %196, %199 : vector<16x128xi1>
    %201 = arith.cmpf olt, %193, %160 : vector<16x128xf32>
    %202 = arith.andi %200, %201 : vector<16x128xi1>
    %c45 = arith.constant 45 : index
    %203 = memref.load %arg1[%c45] : memref<144xf32, #tpu.memory_space<smem>>
    %c46 = arith.constant 46 : index
    %204 = memref.load %arg1[%c46] : memref<144xf32, #tpu.memory_space<smem>>
    %205 = vector.broadcast %204 : f32 to vector<16x128xf32>
    %206 = arith.mulf %173, %205 : vector<16x128xf32>
    %207 = vector.broadcast %203 : f32 to vector<16x128xf32>
    %208 = arith.addf %207, %206 : vector<16x128xf32>
    %c47 = arith.constant 47 : index
    %209 = memref.load %arg1[%c47] : memref<144xf32, #tpu.memory_space<smem>>
    %210 = vector.broadcast %209 : f32 to vector<16x128xf32>
    %211 = arith.mulf %183, %210 : vector<16x128xf32>
    %212 = arith.addf %208, %211 : vector<16x128xf32>
    %c48 = arith.constant 48 : index
    %213 = memref.load %arg1[%c48] : memref<144xf32, #tpu.memory_space<smem>>
    %c49 = arith.constant 49 : index
    %214 = memref.load %arg1[%c49] : memref<144xf32, #tpu.memory_space<smem>>
    %215 = vector.broadcast %214 : f32 to vector<16x128xf32>
    %216 = arith.mulf %173, %215 : vector<16x128xf32>
    %217 = vector.broadcast %213 : f32 to vector<16x128xf32>
    %218 = arith.addf %217, %216 : vector<16x128xf32>
    %c50 = arith.constant 50 : index
    %219 = memref.load %arg1[%c50] : memref<144xf32, #tpu.memory_space<smem>>
    %220 = vector.broadcast %219 : f32 to vector<16x128xf32>
    %221 = arith.mulf %183, %220 : vector<16x128xf32>
    %222 = arith.addf %218, %221 : vector<16x128xf32>
    %c51 = arith.constant 51 : index
    %223 = memref.load %arg1[%c51] : memref<144xf32, #tpu.memory_space<smem>>
    %c52 = arith.constant 52 : index
    %224 = memref.load %arg1[%c52] : memref<144xf32, #tpu.memory_space<smem>>
    %225 = vector.broadcast %224 : f32 to vector<16x128xf32>
    %226 = arith.mulf %173, %225 : vector<16x128xf32>
    %227 = vector.broadcast %223 : f32 to vector<16x128xf32>
    %228 = arith.addf %227, %226 : vector<16x128xf32>
    %c53 = arith.constant 53 : index
    %229 = memref.load %arg1[%c53] : memref<144xf32, #tpu.memory_space<smem>>
    %230 = vector.broadcast %229 : f32 to vector<16x128xf32>
    %231 = arith.mulf %183, %230 : vector<16x128xf32>
    %232 = arith.addf %228, %231 : vector<16x128xf32>
    %233 = arith.select %202, %193, %160 : vector<16x128xi1>, vector<16x128xf32>
    %234 = arith.select %202, %212, %161 : vector<16x128xi1>, vector<16x128xf32>
    %235 = arith.select %202, %222, %162 : vector<16x128xi1>, vector<16x128xf32>
    %236 = arith.select %202, %232, %163 : vector<16x128xi1>, vector<16x128xf32>
    %c54 = arith.constant 54 : index
    %237 = memref.load %arg1[%c54] : memref<144xf32, #tpu.memory_space<smem>>
    %238 = vector.broadcast %237 : f32 to vector<16x128xf32>
    %239 = arith.mulf %238, %12 : vector<16x128xf32>
    %c55 = arith.constant 55 : index
    %240 = memref.load %arg1[%c55] : memref<144xf32, #tpu.memory_space<smem>>
    %241 = vector.broadcast %240 : f32 to vector<16x128xf32>
    %242 = arith.mulf %241, %13 : vector<16x128xf32>
    %243 = arith.addf %239, %242 : vector<16x128xf32>
    %c56 = arith.constant 56 : index
    %244 = memref.load %arg1[%c56] : memref<144xf32, #tpu.memory_space<smem>>
    %245 = vector.broadcast %244 : f32 to vector<16x128xf32>
    %246 = arith.addf %243, %245 : vector<16x128xf32>
    %c57 = arith.constant 57 : index
    %247 = memref.load %arg1[%c57] : memref<144xf32, #tpu.memory_space<smem>>
    %248 = vector.broadcast %247 : f32 to vector<16x128xf32>
    %249 = arith.mulf %248, %12 : vector<16x128xf32>
    %c58 = arith.constant 58 : index
    %250 = memref.load %arg1[%c58] : memref<144xf32, #tpu.memory_space<smem>>
    %251 = vector.broadcast %250 : f32 to vector<16x128xf32>
    %252 = arith.mulf %251, %13 : vector<16x128xf32>
    %253 = arith.addf %249, %252 : vector<16x128xf32>
    %c59 = arith.constant 59 : index
    %254 = memref.load %arg1[%c59] : memref<144xf32, #tpu.memory_space<smem>>
    %255 = vector.broadcast %254 : f32 to vector<16x128xf32>
    %256 = arith.addf %253, %255 : vector<16x128xf32>
    %c60 = arith.constant 60 : index
    %257 = memref.load %arg1[%c60] : memref<144xf32, #tpu.memory_space<smem>>
    %c61 = arith.constant 61 : index
    %258 = memref.load %arg1[%c61] : memref<144xf32, #tpu.memory_space<smem>>
    %259 = vector.broadcast %258 : f32 to vector<16x128xf32>
    %260 = arith.mulf %246, %259 : vector<16x128xf32>
    %261 = vector.broadcast %257 : f32 to vector<16x128xf32>
    %262 = arith.addf %261, %260 : vector<16x128xf32>
    %c62 = arith.constant 62 : index
    %263 = memref.load %arg1[%c62] : memref<144xf32, #tpu.memory_space<smem>>
    %264 = vector.broadcast %263 : f32 to vector<16x128xf32>
    %265 = arith.mulf %256, %264 : vector<16x128xf32>
    %266 = arith.addf %262, %265 : vector<16x128xf32>
    %267 = arith.minimumf %246, %256 : vector<16x128xf32>
    %cst_9 = arith.constant 0.000000e+00 : f32
    %268 = vector.broadcast %cst_9 : f32 to vector<16x128xf32>
    %269 = arith.cmpf oge, %267, %268 : vector<16x128xf32>
    %270 = arith.addf %246, %256 : vector<16x128xf32>
    %cst_10 = arith.constant 1.000000e+00 : f32
    %271 = vector.broadcast %cst_10 : f32 to vector<16x128xf32>
    %272 = arith.cmpf ole, %270, %271 : vector<16x128xf32>
    %273 = arith.andi %269, %272 : vector<16x128xi1>
    %274 = arith.cmpf olt, %266, %233 : vector<16x128xf32>
    %275 = arith.andi %273, %274 : vector<16x128xi1>
    %c63 = arith.constant 63 : index
    %276 = memref.load %arg1[%c63] : memref<144xf32, #tpu.memory_space<smem>>
    %c64 = arith.constant 64 : index
    %277 = memref.load %arg1[%c64] : memref<144xf32, #tpu.memory_space<smem>>
    %278 = vector.broadcast %277 : f32 to vector<16x128xf32>
    %279 = arith.mulf %246, %278 : vector<16x128xf32>
    %280 = vector.broadcast %276 : f32 to vector<16x128xf32>
    %281 = arith.addf %280, %279 : vector<16x128xf32>
    %c65 = arith.constant 65 : index
    %282 = memref.load %arg1[%c65] : memref<144xf32, #tpu.memory_space<smem>>
    %283 = vector.broadcast %282 : f32 to vector<16x128xf32>
    %284 = arith.mulf %256, %283 : vector<16x128xf32>
    %285 = arith.addf %281, %284 : vector<16x128xf32>
    %c66 = arith.constant 66 : index
    %286 = memref.load %arg1[%c66] : memref<144xf32, #tpu.memory_space<smem>>
    %c67 = arith.constant 67 : index
    %287 = memref.load %arg1[%c67] : memref<144xf32, #tpu.memory_space<smem>>
    %288 = vector.broadcast %287 : f32 to vector<16x128xf32>
    %289 = arith.mulf %246, %288 : vector<16x128xf32>
    %290 = vector.broadcast %286 : f32 to vector<16x128xf32>
    %291 = arith.addf %290, %289 : vector<16x128xf32>
    %c68 = arith.constant 68 : index
    %292 = memref.load %arg1[%c68] : memref<144xf32, #tpu.memory_space<smem>>
    %293 = vector.broadcast %292 : f32 to vector<16x128xf32>
    %294 = arith.mulf %256, %293 : vector<16x128xf32>
    %295 = arith.addf %291, %294 : vector<16x128xf32>
    %c69 = arith.constant 69 : index
    %296 = memref.load %arg1[%c69] : memref<144xf32, #tpu.memory_space<smem>>
    %c70 = arith.constant 70 : index
    %297 = memref.load %arg1[%c70] : memref<144xf32, #tpu.memory_space<smem>>
    %298 = vector.broadcast %297 : f32 to vector<16x128xf32>
    %299 = arith.mulf %246, %298 : vector<16x128xf32>
    %300 = vector.broadcast %296 : f32 to vector<16x128xf32>
    %301 = arith.addf %300, %299 : vector<16x128xf32>
    %c71 = arith.constant 71 : index
    %302 = memref.load %arg1[%c71] : memref<144xf32, #tpu.memory_space<smem>>
    %303 = vector.broadcast %302 : f32 to vector<16x128xf32>
    %304 = arith.mulf %256, %303 : vector<16x128xf32>
    %305 = arith.addf %301, %304 : vector<16x128xf32>
    %306 = arith.select %275, %266, %233 : vector<16x128xi1>, vector<16x128xf32>
    %307 = arith.select %275, %285, %234 : vector<16x128xi1>, vector<16x128xf32>
    %308 = arith.select %275, %295, %235 : vector<16x128xi1>, vector<16x128xf32>
    %309 = arith.select %275, %305, %236 : vector<16x128xi1>, vector<16x128xf32>
    %c72 = arith.constant 72 : index
    %310 = memref.load %arg1[%c72] : memref<144xf32, #tpu.memory_space<smem>>
    %311 = vector.broadcast %310 : f32 to vector<16x128xf32>
    %312 = arith.mulf %311, %12 : vector<16x128xf32>
    %c73 = arith.constant 73 : index
    %313 = memref.load %arg1[%c73] : memref<144xf32, #tpu.memory_space<smem>>
    %314 = vector.broadcast %313 : f32 to vector<16x128xf32>
    %315 = arith.mulf %314, %13 : vector<16x128xf32>
    %316 = arith.addf %312, %315 : vector<16x128xf32>
    %c74 = arith.constant 74 : index
    %317 = memref.load %arg1[%c74] : memref<144xf32, #tpu.memory_space<smem>>
    %318 = vector.broadcast %317 : f32 to vector<16x128xf32>
    %319 = arith.addf %316, %318 : vector<16x128xf32>
    %c75 = arith.constant 75 : index
    %320 = memref.load %arg1[%c75] : memref<144xf32, #tpu.memory_space<smem>>
    %321 = vector.broadcast %320 : f32 to vector<16x128xf32>
    %322 = arith.mulf %321, %12 : vector<16x128xf32>
    %c76 = arith.constant 76 : index
    %323 = memref.load %arg1[%c76] : memref<144xf32, #tpu.memory_space<smem>>
    %324 = vector.broadcast %323 : f32 to vector<16x128xf32>
    %325 = arith.mulf %324, %13 : vector<16x128xf32>
    %326 = arith.addf %322, %325 : vector<16x128xf32>
    %c77 = arith.constant 77 : index
    %327 = memref.load %arg1[%c77] : memref<144xf32, #tpu.memory_space<smem>>
    %328 = vector.broadcast %327 : f32 to vector<16x128xf32>
    %329 = arith.addf %326, %328 : vector<16x128xf32>
    %c78 = arith.constant 78 : index
    %330 = memref.load %arg1[%c78] : memref<144xf32, #tpu.memory_space<smem>>
    %c79 = arith.constant 79 : index
    %331 = memref.load %arg1[%c79] : memref<144xf32, #tpu.memory_space<smem>>
    %332 = vector.broadcast %331 : f32 to vector<16x128xf32>
    %333 = arith.mulf %319, %332 : vector<16x128xf32>
    %334 = vector.broadcast %330 : f32 to vector<16x128xf32>
    %335 = arith.addf %334, %333 : vector<16x128xf32>
    %c80 = arith.constant 80 : index
    %336 = memref.load %arg1[%c80] : memref<144xf32, #tpu.memory_space<smem>>
    %337 = vector.broadcast %336 : f32 to vector<16x128xf32>
    %338 = arith.mulf %329, %337 : vector<16x128xf32>
    %339 = arith.addf %335, %338 : vector<16x128xf32>
    %340 = arith.minimumf %319, %329 : vector<16x128xf32>
    %cst_11 = arith.constant 0.000000e+00 : f32
    %341 = vector.broadcast %cst_11 : f32 to vector<16x128xf32>
    %342 = arith.cmpf oge, %340, %341 : vector<16x128xf32>
    %343 = arith.addf %319, %329 : vector<16x128xf32>
    %cst_12 = arith.constant 1.000000e+00 : f32
    %344 = vector.broadcast %cst_12 : f32 to vector<16x128xf32>
    %345 = arith.cmpf ole, %343, %344 : vector<16x128xf32>
    %346 = arith.andi %342, %345 : vector<16x128xi1>
    %347 = arith.cmpf olt, %339, %306 : vector<16x128xf32>
    %348 = arith.andi %346, %347 : vector<16x128xi1>
    %c81 = arith.constant 81 : index
    %349 = memref.load %arg1[%c81] : memref<144xf32, #tpu.memory_space<smem>>
    %c82 = arith.constant 82 : index
    %350 = memref.load %arg1[%c82] : memref<144xf32, #tpu.memory_space<smem>>
    %351 = vector.broadcast %350 : f32 to vector<16x128xf32>
    %352 = arith.mulf %319, %351 : vector<16x128xf32>
    %353 = vector.broadcast %349 : f32 to vector<16x128xf32>
    %354 = arith.addf %353, %352 : vector<16x128xf32>
    %c83 = arith.constant 83 : index
    %355 = memref.load %arg1[%c83] : memref<144xf32, #tpu.memory_space<smem>>
    %356 = vector.broadcast %355 : f32 to vector<16x128xf32>
    %357 = arith.mulf %329, %356 : vector<16x128xf32>
    %358 = arith.addf %354, %357 : vector<16x128xf32>
    %c84 = arith.constant 84 : index
    %359 = memref.load %arg1[%c84] : memref<144xf32, #tpu.memory_space<smem>>
    %c85 = arith.constant 85 : index
    %360 = memref.load %arg1[%c85] : memref<144xf32, #tpu.memory_space<smem>>
    %361 = vector.broadcast %360 : f32 to vector<16x128xf32>
    %362 = arith.mulf %319, %361 : vector<16x128xf32>
    %363 = vector.broadcast %359 : f32 to vector<16x128xf32>
    %364 = arith.addf %363, %362 : vector<16x128xf32>
    %c86 = arith.constant 86 : index
    %365 = memref.load %arg1[%c86] : memref<144xf32, #tpu.memory_space<smem>>
    %366 = vector.broadcast %365 : f32 to vector<16x128xf32>
    %367 = arith.mulf %329, %366 : vector<16x128xf32>
    %368 = arith.addf %364, %367 : vector<16x128xf32>
    %c87 = arith.constant 87 : index
    %369 = memref.load %arg1[%c87] : memref<144xf32, #tpu.memory_space<smem>>
    %c88 = arith.constant 88 : index
    %370 = memref.load %arg1[%c88] : memref<144xf32, #tpu.memory_space<smem>>
    %371 = vector.broadcast %370 : f32 to vector<16x128xf32>
    %372 = arith.mulf %319, %371 : vector<16x128xf32>
    %373 = vector.broadcast %369 : f32 to vector<16x128xf32>
    %374 = arith.addf %373, %372 : vector<16x128xf32>
    %c89 = arith.constant 89 : index
    %375 = memref.load %arg1[%c89] : memref<144xf32, #tpu.memory_space<smem>>
    %376 = vector.broadcast %375 : f32 to vector<16x128xf32>
    %377 = arith.mulf %329, %376 : vector<16x128xf32>
    %378 = arith.addf %374, %377 : vector<16x128xf32>
    %379 = arith.select %348, %339, %306 : vector<16x128xi1>, vector<16x128xf32>
    %380 = arith.select %348, %358, %307 : vector<16x128xi1>, vector<16x128xf32>
    %381 = arith.select %348, %368, %308 : vector<16x128xi1>, vector<16x128xf32>
    %382 = arith.select %348, %378, %309 : vector<16x128xi1>, vector<16x128xf32>
    %c90 = arith.constant 90 : index
    %383 = memref.load %arg1[%c90] : memref<144xf32, #tpu.memory_space<smem>>
    %384 = vector.broadcast %383 : f32 to vector<16x128xf32>
    %385 = arith.mulf %384, %12 : vector<16x128xf32>
    %c91 = arith.constant 91 : index
    %386 = memref.load %arg1[%c91] : memref<144xf32, #tpu.memory_space<smem>>
    %387 = vector.broadcast %386 : f32 to vector<16x128xf32>
    %388 = arith.mulf %387, %13 : vector<16x128xf32>
    %389 = arith.addf %385, %388 : vector<16x128xf32>
    %c92 = arith.constant 92 : index
    %390 = memref.load %arg1[%c92] : memref<144xf32, #tpu.memory_space<smem>>
    %391 = vector.broadcast %390 : f32 to vector<16x128xf32>
    %392 = arith.addf %389, %391 : vector<16x128xf32>
    %c93 = arith.constant 93 : index
    %393 = memref.load %arg1[%c93] : memref<144xf32, #tpu.memory_space<smem>>
    %394 = vector.broadcast %393 : f32 to vector<16x128xf32>
    %395 = arith.mulf %394, %12 : vector<16x128xf32>
    %c94 = arith.constant 94 : index
    %396 = memref.load %arg1[%c94] : memref<144xf32, #tpu.memory_space<smem>>
    %397 = vector.broadcast %396 : f32 to vector<16x128xf32>
    %398 = arith.mulf %397, %13 : vector<16x128xf32>
    %399 = arith.addf %395, %398 : vector<16x128xf32>
    %c95 = arith.constant 95 : index
    %400 = memref.load %arg1[%c95] : memref<144xf32, #tpu.memory_space<smem>>
    %401 = vector.broadcast %400 : f32 to vector<16x128xf32>
    %402 = arith.addf %399, %401 : vector<16x128xf32>
    %c96 = arith.constant 96 : index
    %403 = memref.load %arg1[%c96] : memref<144xf32, #tpu.memory_space<smem>>
    %c97 = arith.constant 97 : index
    %404 = memref.load %arg1[%c97] : memref<144xf32, #tpu.memory_space<smem>>
    %405 = vector.broadcast %404 : f32 to vector<16x128xf32>
    %406 = arith.mulf %392, %405 : vector<16x128xf32>
    %407 = vector.broadcast %403 : f32 to vector<16x128xf32>
    %408 = arith.addf %407, %406 : vector<16x128xf32>
    %c98 = arith.constant 98 : index
    %409 = memref.load %arg1[%c98] : memref<144xf32, #tpu.memory_space<smem>>
    %410 = vector.broadcast %409 : f32 to vector<16x128xf32>
    %411 = arith.mulf %402, %410 : vector<16x128xf32>
    %412 = arith.addf %408, %411 : vector<16x128xf32>
    %413 = arith.minimumf %392, %402 : vector<16x128xf32>
    %cst_13 = arith.constant 0.000000e+00 : f32
    %414 = vector.broadcast %cst_13 : f32 to vector<16x128xf32>
    %415 = arith.cmpf oge, %413, %414 : vector<16x128xf32>
    %416 = arith.addf %392, %402 : vector<16x128xf32>
    %cst_14 = arith.constant 1.000000e+00 : f32
    %417 = vector.broadcast %cst_14 : f32 to vector<16x128xf32>
    %418 = arith.cmpf ole, %416, %417 : vector<16x128xf32>
    %419 = arith.andi %415, %418 : vector<16x128xi1>
    %420 = arith.cmpf olt, %412, %379 : vector<16x128xf32>
    %421 = arith.andi %419, %420 : vector<16x128xi1>
    %c99 = arith.constant 99 : index
    %422 = memref.load %arg1[%c99] : memref<144xf32, #tpu.memory_space<smem>>
    %c100 = arith.constant 100 : index
    %423 = memref.load %arg1[%c100] : memref<144xf32, #tpu.memory_space<smem>>
    %424 = vector.broadcast %423 : f32 to vector<16x128xf32>
    %425 = arith.mulf %392, %424 : vector<16x128xf32>
    %426 = vector.broadcast %422 : f32 to vector<16x128xf32>
    %427 = arith.addf %426, %425 : vector<16x128xf32>
    %c101 = arith.constant 101 : index
    %428 = memref.load %arg1[%c101] : memref<144xf32, #tpu.memory_space<smem>>
    %429 = vector.broadcast %428 : f32 to vector<16x128xf32>
    %430 = arith.mulf %402, %429 : vector<16x128xf32>
    %431 = arith.addf %427, %430 : vector<16x128xf32>
    %c102 = arith.constant 102 : index
    %432 = memref.load %arg1[%c102] : memref<144xf32, #tpu.memory_space<smem>>
    %c103 = arith.constant 103 : index
    %433 = memref.load %arg1[%c103] : memref<144xf32, #tpu.memory_space<smem>>
    %434 = vector.broadcast %433 : f32 to vector<16x128xf32>
    %435 = arith.mulf %392, %434 : vector<16x128xf32>
    %436 = vector.broadcast %432 : f32 to vector<16x128xf32>
    %437 = arith.addf %436, %435 : vector<16x128xf32>
    %c104 = arith.constant 104 : index
    %438 = memref.load %arg1[%c104] : memref<144xf32, #tpu.memory_space<smem>>
    %439 = vector.broadcast %438 : f32 to vector<16x128xf32>
    %440 = arith.mulf %402, %439 : vector<16x128xf32>
    %441 = arith.addf %437, %440 : vector<16x128xf32>
    %c105 = arith.constant 105 : index
    %442 = memref.load %arg1[%c105] : memref<144xf32, #tpu.memory_space<smem>>
    %c106 = arith.constant 106 : index
    %443 = memref.load %arg1[%c106] : memref<144xf32, #tpu.memory_space<smem>>
    %444 = vector.broadcast %443 : f32 to vector<16x128xf32>
    %445 = arith.mulf %392, %444 : vector<16x128xf32>
    %446 = vector.broadcast %442 : f32 to vector<16x128xf32>
    %447 = arith.addf %446, %445 : vector<16x128xf32>
    %c107 = arith.constant 107 : index
    %448 = memref.load %arg1[%c107] : memref<144xf32, #tpu.memory_space<smem>>
    %449 = vector.broadcast %448 : f32 to vector<16x128xf32>
    %450 = arith.mulf %402, %449 : vector<16x128xf32>
    %451 = arith.addf %447, %450 : vector<16x128xf32>
    %452 = arith.select %421, %412, %379 : vector<16x128xi1>, vector<16x128xf32>
    %453 = arith.select %421, %431, %380 : vector<16x128xi1>, vector<16x128xf32>
    %454 = arith.select %421, %441, %381 : vector<16x128xi1>, vector<16x128xf32>
    %455 = arith.select %421, %451, %382 : vector<16x128xi1>, vector<16x128xf32>
    %c108 = arith.constant 108 : index
    %456 = memref.load %arg1[%c108] : memref<144xf32, #tpu.memory_space<smem>>
    %457 = vector.broadcast %456 : f32 to vector<16x128xf32>
    %458 = arith.mulf %457, %12 : vector<16x128xf32>
    %c109 = arith.constant 109 : index
    %459 = memref.load %arg1[%c109] : memref<144xf32, #tpu.memory_space<smem>>
    %460 = vector.broadcast %459 : f32 to vector<16x128xf32>
    %461 = arith.mulf %460, %13 : vector<16x128xf32>
    %462 = arith.addf %458, %461 : vector<16x128xf32>
    %c110 = arith.constant 110 : index
    %463 = memref.load %arg1[%c110] : memref<144xf32, #tpu.memory_space<smem>>
    %464 = vector.broadcast %463 : f32 to vector<16x128xf32>
    %465 = arith.addf %462, %464 : vector<16x128xf32>
    %c111 = arith.constant 111 : index
    %466 = memref.load %arg1[%c111] : memref<144xf32, #tpu.memory_space<smem>>
    %467 = vector.broadcast %466 : f32 to vector<16x128xf32>
    %468 = arith.mulf %467, %12 : vector<16x128xf32>
    %c112 = arith.constant 112 : index
    %469 = memref.load %arg1[%c112] : memref<144xf32, #tpu.memory_space<smem>>
    %470 = vector.broadcast %469 : f32 to vector<16x128xf32>
    %471 = arith.mulf %470, %13 : vector<16x128xf32>
    %472 = arith.addf %468, %471 : vector<16x128xf32>
    %c113 = arith.constant 113 : index
    %473 = memref.load %arg1[%c113] : memref<144xf32, #tpu.memory_space<smem>>
    %474 = vector.broadcast %473 : f32 to vector<16x128xf32>
    %475 = arith.addf %472, %474 : vector<16x128xf32>
    %c114 = arith.constant 114 : index
    %476 = memref.load %arg1[%c114] : memref<144xf32, #tpu.memory_space<smem>>
    %c115 = arith.constant 115 : index
    %477 = memref.load %arg1[%c115] : memref<144xf32, #tpu.memory_space<smem>>
    %478 = vector.broadcast %477 : f32 to vector<16x128xf32>
    %479 = arith.mulf %465, %478 : vector<16x128xf32>
    %480 = vector.broadcast %476 : f32 to vector<16x128xf32>
    %481 = arith.addf %480, %479 : vector<16x128xf32>
    %c116 = arith.constant 116 : index
    %482 = memref.load %arg1[%c116] : memref<144xf32, #tpu.memory_space<smem>>
    %483 = vector.broadcast %482 : f32 to vector<16x128xf32>
    %484 = arith.mulf %475, %483 : vector<16x128xf32>
    %485 = arith.addf %481, %484 : vector<16x128xf32>
    %486 = arith.minimumf %465, %475 : vector<16x128xf32>
    %cst_15 = arith.constant 0.000000e+00 : f32
    %487 = vector.broadcast %cst_15 : f32 to vector<16x128xf32>
    %488 = arith.cmpf oge, %486, %487 : vector<16x128xf32>
    %489 = arith.addf %465, %475 : vector<16x128xf32>
    %cst_16 = arith.constant 1.000000e+00 : f32
    %490 = vector.broadcast %cst_16 : f32 to vector<16x128xf32>
    %491 = arith.cmpf ole, %489, %490 : vector<16x128xf32>
    %492 = arith.andi %488, %491 : vector<16x128xi1>
    %493 = arith.cmpf olt, %485, %452 : vector<16x128xf32>
    %494 = arith.andi %492, %493 : vector<16x128xi1>
    %c117 = arith.constant 117 : index
    %495 = memref.load %arg1[%c117] : memref<144xf32, #tpu.memory_space<smem>>
    %c118 = arith.constant 118 : index
    %496 = memref.load %arg1[%c118] : memref<144xf32, #tpu.memory_space<smem>>
    %497 = vector.broadcast %496 : f32 to vector<16x128xf32>
    %498 = arith.mulf %465, %497 : vector<16x128xf32>
    %499 = vector.broadcast %495 : f32 to vector<16x128xf32>
    %500 = arith.addf %499, %498 : vector<16x128xf32>
    %c119 = arith.constant 119 : index
    %501 = memref.load %arg1[%c119] : memref<144xf32, #tpu.memory_space<smem>>
    %502 = vector.broadcast %501 : f32 to vector<16x128xf32>
    %503 = arith.mulf %475, %502 : vector<16x128xf32>
    %504 = arith.addf %500, %503 : vector<16x128xf32>
    %c120 = arith.constant 120 : index
    %505 = memref.load %arg1[%c120] : memref<144xf32, #tpu.memory_space<smem>>
    %c121 = arith.constant 121 : index
    %506 = memref.load %arg1[%c121] : memref<144xf32, #tpu.memory_space<smem>>
    %507 = vector.broadcast %506 : f32 to vector<16x128xf32>
    %508 = arith.mulf %465, %507 : vector<16x128xf32>
    %509 = vector.broadcast %505 : f32 to vector<16x128xf32>
    %510 = arith.addf %509, %508 : vector<16x128xf32>
    %c122 = arith.constant 122 : index
    %511 = memref.load %arg1[%c122] : memref<144xf32, #tpu.memory_space<smem>>
    %512 = vector.broadcast %511 : f32 to vector<16x128xf32>
    %513 = arith.mulf %475, %512 : vector<16x128xf32>
    %514 = arith.addf %510, %513 : vector<16x128xf32>
    %c123 = arith.constant 123 : index
    %515 = memref.load %arg1[%c123] : memref<144xf32, #tpu.memory_space<smem>>
    %c124 = arith.constant 124 : index
    %516 = memref.load %arg1[%c124] : memref<144xf32, #tpu.memory_space<smem>>
    %517 = vector.broadcast %516 : f32 to vector<16x128xf32>
    %518 = arith.mulf %465, %517 : vector<16x128xf32>
    %519 = vector.broadcast %515 : f32 to vector<16x128xf32>
    %520 = arith.addf %519, %518 : vector<16x128xf32>
    %c125 = arith.constant 125 : index
    %521 = memref.load %arg1[%c125] : memref<144xf32, #tpu.memory_space<smem>>
    %522 = vector.broadcast %521 : f32 to vector<16x128xf32>
    %523 = arith.mulf %475, %522 : vector<16x128xf32>
    %524 = arith.addf %520, %523 : vector<16x128xf32>
    %525 = arith.select %494, %485, %452 : vector<16x128xi1>, vector<16x128xf32>
    %526 = arith.select %494, %504, %453 : vector<16x128xi1>, vector<16x128xf32>
    %527 = arith.select %494, %514, %454 : vector<16x128xi1>, vector<16x128xf32>
    %528 = arith.select %494, %524, %455 : vector<16x128xi1>, vector<16x128xf32>
    %c126 = arith.constant 126 : index
    %529 = memref.load %arg1[%c126] : memref<144xf32, #tpu.memory_space<smem>>
    %530 = vector.broadcast %529 : f32 to vector<16x128xf32>
    %531 = arith.mulf %530, %12 : vector<16x128xf32>
    %c127 = arith.constant 127 : index
    %532 = memref.load %arg1[%c127] : memref<144xf32, #tpu.memory_space<smem>>
    %533 = vector.broadcast %532 : f32 to vector<16x128xf32>
    %534 = arith.mulf %533, %13 : vector<16x128xf32>
    %535 = arith.addf %531, %534 : vector<16x128xf32>
    %c128 = arith.constant 128 : index
    %536 = memref.load %arg1[%c128] : memref<144xf32, #tpu.memory_space<smem>>
    %537 = vector.broadcast %536 : f32 to vector<16x128xf32>
    %538 = arith.addf %535, %537 : vector<16x128xf32>
    %c129 = arith.constant 129 : index
    %539 = memref.load %arg1[%c129] : memref<144xf32, #tpu.memory_space<smem>>
    %540 = vector.broadcast %539 : f32 to vector<16x128xf32>
    %541 = arith.mulf %540, %12 : vector<16x128xf32>
    %c130 = arith.constant 130 : index
    %542 = memref.load %arg1[%c130] : memref<144xf32, #tpu.memory_space<smem>>
    %543 = vector.broadcast %542 : f32 to vector<16x128xf32>
    %544 = arith.mulf %543, %13 : vector<16x128xf32>
    %545 = arith.addf %541, %544 : vector<16x128xf32>
    %c131 = arith.constant 131 : index
    %546 = memref.load %arg1[%c131] : memref<144xf32, #tpu.memory_space<smem>>
    %547 = vector.broadcast %546 : f32 to vector<16x128xf32>
    %548 = arith.addf %545, %547 : vector<16x128xf32>
    %c132 = arith.constant 132 : index
    %549 = memref.load %arg1[%c132] : memref<144xf32, #tpu.memory_space<smem>>
    %c133 = arith.constant 133 : index
    %550 = memref.load %arg1[%c133] : memref<144xf32, #tpu.memory_space<smem>>
    %551 = vector.broadcast %550 : f32 to vector<16x128xf32>
    %552 = arith.mulf %538, %551 : vector<16x128xf32>
    %553 = vector.broadcast %549 : f32 to vector<16x128xf32>
    %554 = arith.addf %553, %552 : vector<16x128xf32>
    %c134 = arith.constant 134 : index
    %555 = memref.load %arg1[%c134] : memref<144xf32, #tpu.memory_space<smem>>
    %556 = vector.broadcast %555 : f32 to vector<16x128xf32>
    %557 = arith.mulf %548, %556 : vector<16x128xf32>
    %558 = arith.addf %554, %557 : vector<16x128xf32>
    %559 = arith.minimumf %538, %548 : vector<16x128xf32>
    %cst_17 = arith.constant 0.000000e+00 : f32
    %560 = vector.broadcast %cst_17 : f32 to vector<16x128xf32>
    %561 = arith.cmpf oge, %559, %560 : vector<16x128xf32>
    %562 = arith.addf %538, %548 : vector<16x128xf32>
    %cst_18 = arith.constant 1.000000e+00 : f32
    %563 = vector.broadcast %cst_18 : f32 to vector<16x128xf32>
    %564 = arith.cmpf ole, %562, %563 : vector<16x128xf32>
    %565 = arith.andi %561, %564 : vector<16x128xi1>
    %566 = arith.cmpf olt, %558, %525 : vector<16x128xf32>
    %567 = arith.andi %565, %566 : vector<16x128xi1>
    %c135 = arith.constant 135 : index
    %568 = memref.load %arg1[%c135] : memref<144xf32, #tpu.memory_space<smem>>
    %c136 = arith.constant 136 : index
    %569 = memref.load %arg1[%c136] : memref<144xf32, #tpu.memory_space<smem>>
    %570 = vector.broadcast %569 : f32 to vector<16x128xf32>
    %571 = arith.mulf %538, %570 : vector<16x128xf32>
    %572 = vector.broadcast %568 : f32 to vector<16x128xf32>
    %573 = arith.addf %572, %571 : vector<16x128xf32>
    %c137 = arith.constant 137 : index
    %574 = memref.load %arg1[%c137] : memref<144xf32, #tpu.memory_space<smem>>
    %575 = vector.broadcast %574 : f32 to vector<16x128xf32>
    %576 = arith.mulf %548, %575 : vector<16x128xf32>
    %577 = arith.addf %573, %576 : vector<16x128xf32>
    %c138 = arith.constant 138 : index
    %578 = memref.load %arg1[%c138] : memref<144xf32, #tpu.memory_space<smem>>
    %c139 = arith.constant 139 : index
    %579 = memref.load %arg1[%c139] : memref<144xf32, #tpu.memory_space<smem>>
    %580 = vector.broadcast %579 : f32 to vector<16x128xf32>
    %581 = arith.mulf %538, %580 : vector<16x128xf32>
    %582 = vector.broadcast %578 : f32 to vector<16x128xf32>
    %583 = arith.addf %582, %581 : vector<16x128xf32>
    %c140 = arith.constant 140 : index
    %584 = memref.load %arg1[%c140] : memref<144xf32, #tpu.memory_space<smem>>
    %585 = vector.broadcast %584 : f32 to vector<16x128xf32>
    %586 = arith.mulf %548, %585 : vector<16x128xf32>
    %587 = arith.addf %583, %586 : vector<16x128xf32>
    %c141 = arith.constant 141 : index
    %588 = memref.load %arg1[%c141] : memref<144xf32, #tpu.memory_space<smem>>
    %c142 = arith.constant 142 : index
    %589 = memref.load %arg1[%c142] : memref<144xf32, #tpu.memory_space<smem>>
    %590 = vector.broadcast %589 : f32 to vector<16x128xf32>
    %591 = arith.mulf %538, %590 : vector<16x128xf32>
    %592 = vector.broadcast %588 : f32 to vector<16x128xf32>
    %593 = arith.addf %592, %591 : vector<16x128xf32>
    %c143 = arith.constant 143 : index
    %594 = memref.load %arg1[%c143] : memref<144xf32, #tpu.memory_space<smem>>
    %595 = vector.broadcast %594 : f32 to vector<16x128xf32>
    %596 = arith.mulf %548, %595 : vector<16x128xf32>
    %597 = arith.addf %593, %596 : vector<16x128xf32>
    %598 = arith.select %567, %558, %525 : vector<16x128xi1>, vector<16x128xf32>
    %599 = arith.select %567, %577, %526 : vector<16x128xi1>, vector<16x128xf32>
    %600 = arith.select %567, %587, %527 : vector<16x128xi1>, vector<16x128xf32>
    %601 = arith.select %567, %597, %528 : vector<16x128xi1>, vector<16x128xf32>
    %c0_19 = arith.constant 0 : index
    %c0_20 = arith.constant 0 : index
    %c0_21 = arith.constant 0 : index
    %602 = vector.load %arg2[%c0_19, %c0_20, %c0_21] : memref<4x16x128xf32, #tpu.memory_space<vmem>>, vector<1x16x128xf32>
    %603 = vector.shape_cast %602 : vector<1x16x128xf32> to vector<16x128xf32>
    %604 = vector.shape_cast %599 : vector<16x128xf32> to vector<1x16x128xf32>
    tpu.vector_store %arg2[%c0_19, %c0_20, %c0_21], %604 {strides = array<i32>} : memref<4x16x128xf32, #tpu.memory_space<vmem>>, vector<1x16x128xf32>,
    %c1_22 = arith.constant 1 : index
    %c0_23 = arith.constant 0 : index
    %c0_24 = arith.constant 0 : index
    %605 = vector.load %arg2[%c1_22, %c0_23, %c0_24] : memref<4x16x128xf32, #tpu.memory_space<vmem>>, vector<1x16x128xf32>
    %606 = vector.shape_cast %605 : vector<1x16x128xf32> to vector<16x128xf32>
    %607 = vector.shape_cast %600 : vector<16x128xf32> to vector<1x16x128xf32>
    tpu.vector_store %arg2[%c1_22, %c0_23, %c0_24], %607 {strides = array<i32>} : memref<4x16x128xf32, #tpu.memory_space<vmem>>, vector<1x16x128xf32>,
    %c2_25 = arith.constant 2 : index
    %c0_26 = arith.constant 0 : index
    %c0_27 = arith.constant 0 : index
    %608 = vector.load %arg2[%c2_25, %c0_26, %c0_27] : memref<4x16x128xf32, #tpu.memory_space<vmem>>, vector<1x16x128xf32>
    %609 = vector.shape_cast %608 : vector<1x16x128xf32> to vector<16x128xf32>
    %610 = vector.shape_cast %601 : vector<16x128xf32> to vector<1x16x128xf32>
    tpu.vector_store %arg2[%c2_25, %c0_26, %c0_27], %610 {strides = array<i32>} : memref<4x16x128xf32, #tpu.memory_space<vmem>>, vector<1x16x128xf32>,
    %cst_28 = arith.constant 1.000000e+00 : f32
    %611 = vector.broadcast %cst_28 : f32 to vector<16x128xf32>
    %c3_29 = arith.constant 3 : index
    %c0_30 = arith.constant 0 : index
    %c0_31 = arith.constant 0 : index
    %612 = vector.load %arg2[%c3_29, %c0_30, %c0_31] : memref<4x16x128xf32, #tpu.memory_space<vmem>>, vector<1x16x128xf32>
    %613 = vector.shape_cast %612 : vector<1x16x128xf32> to vector<16x128xf32>
    %614 = vector.shape_cast %611 : vector<16x128xf32> to vector<1x16x128xf32>
    tpu.vector_store %arg2[%c3_29, %c0_30, %c0_31], %614 {strides = array<i32>} : memref<4x16x128xf32, #tpu.memory_space<vmem>>, vector<1x16x128xf32>,
    %cst_32 = arith.constant 1.000000e+30 : f32
    %615 = vector.broadcast %cst_32 : f32 to vector<16x128xf32>
    %616 = arith.cmpf olt, %598, %615 : vector<16x128xf32>
    %cst_33 = arith.constant -1.000000e+00 : f32
    %617 = vector.broadcast %cst_33 : f32 to vector<16x128xf32>
    %618 = arith.select %616, %598, %617 : vector<16x128xi1>, vector<16x128xf32>
    %c0_34 = arith.constant 0 : index
    %c0_35 = arith.constant 0 : index
    %619 = vector.load %arg3[%c0_34, %c0_35] : memref<16x128xf32, #tpu.memory_space<vmem>>, vector<16x128xf32>
    tpu.vector_store %arg3[%c0_34, %c0_35], %618 {strides = array<i32>} : memref<16x128xf32, #tpu.memory_space<vmem>>, vector<16x128xf32>,
    return
  }
  func.func @transform_0(%arg0: i32) -> i32 {
    %c0_i32 = arith.constant 0 : i32
    %c0_i32_0 = arith.constant 0 : i32
    return %c0_i32 : i32
  }
  func.func @transform_1(%arg0: i32) -> (i32, i32, i32) {
    %c0_i32 = arith.constant 0 : i32
    %c0_i32_0 = arith.constant 0 : i32
    %c0_i32_1 = arith.constant 0 : i32
    return %c0_i32, %arg0, %c0_i32_0 : i32, i32, i32
  }
  func.func @transform_2(%arg0: i32) -> (i32, i32) {
    %c0_i32 = arith.constant 0 : i32
    %c0_i32_0 = arith.constant 0 : i32
    return %arg0, %c0_i32 : i32, i32
  }
}

</mosaic_0001>

<bundles_post_ra>
// kernel: tpu_custom_call.1
= control target key start
LH: loop header
LB: loop body
LE: loop exit
PB: predicated region body
PF: predicated region fallthrough
CT: control target
= control target key end

     0   :  { %8 = vsyncpa [#allocation4], 0  ;;  %s2709_s0 = inlined_call_operand.hbm [shape: f32[144], index: 0, kind: input, shape index: {}]   ;;  %s2710_s1 = inlined_call_operand.hbm [shape: f32[4,32,128], index: 1, kind: output, shape index: {0}]   ;;  %s2711_s2 = inlined_call_operand.hbm [shape: f32[32,128], index: 2, kind: output, shape index: {1}]  }
   0x1   :  { %9 = vsyncpa [#allocation3], 0 }
   0x2   :  { %11 = vsyncpa [#allocation3 + $0x1], 0 }
   0x3   :  { %12 = vsyncpa [#allocation7], 0 }
   0x4   :  { %14 = vsyncpa [#allocation7 + $0x1], 0  ;;  %s1531_s9 = smov 0   ;;  %s1533_s10 = smov 0  }
   0x5   :  { %s1535_s11 = smov 0   ;;  %s1537_s12 = smov 0  }
   0x6 LB: > { %s1552_s13 = sadd.s32 4294967295, %s1502_s12   ;;  %s1185_s14 = sadd.s32 4294967294, %s1502_s12   ;;  %s1502_s12 = sphi %s1537_s12, %s2763_s12   ;;  %s1498_s11 = sphi %s1535_s11, %s2762_s11   ;;  %s1494_s10 = sphi %s1533_s10, %s2761_s10   ;;  %s1490_s9 = sphi %s1531_s9, %s2760_s9  }
   0x7   : > { %s1556_s15 = sadd.s32 1, %s1502_s12   ;;  %s48_s16 = sadd.s32 1, %s1498_s11 }
   0x8   : > { %s45_s17 = ssub.s32 %s1502_s12, %s1556_s15  ;;  %p58_p0 = scmp.ne.s32.totalorder %s1498_s11, %s1494_s10 }
   0x9   : > { %p46_p1 = scmp.eq.s32.totalorder %s45_s17, 0  ;;  %p59_p2 = scmp.eq.s32.totalorder %s1552_s13, 1 }
   0xa   : > { %p64_p3 = scmp.ne.s32.totalorder %s1494_s10, %s1490_s9  ;;  %p65_p4 = scmp.eq.s32.totalorder %s1185_s14, 1 }
   0xb   : > { %s1567_s18 = scalar_select %p46_p1, %s1498_s11, %s48_s16  }
   0xc   : > { %p1569_p5 = por %p59_p2, %p58_p0  ;;  %p1573_p6 = por %p65_p4, %p64_p3 }
   0xd   : > { %p1186_p7 = scmp.ge.s32.totalorder %s1502_s12, 1  ;;  %p98_p8 = scmp.lt.s32.totalorder %s1502_s12, 3 }
   0xe   : > { %p1377_p10 = scmp.eq.s32.totalorder %s1552_s13, 0  ;;  %s1504_s21 = smov [#allocation2]  }
   0xf   : > { %p99_p9 = pnand %p1186_p7, %p98_p8 }
  0x11   : > { %p1366_p11 = pneg %p99_p9  ;;  %122 = sbr.rel (%p99_p9) target bundleno = 242 (0xf2), region = 24 }
  0x13   : > { %p1367_p12 = pnand %p1377_p10, %p1366_p11 }
  0x15   : > { %1369 = dma.hbm_to_smem (!%p1367_p12), %s2709_s0, 32, %s1504_s21, [#allocation4]  }
  0x16   : > { %1477 = dma.done.wait (%p1377_p10), [#allocation4], 32  }
  0x17   : > { %1479 = vsyncadd (%p1377_p10), [#allocation4], 4294967264 }
  0x18   : > { %128 = sfence }
  0x19   : > { %s1192_s24 = sshll.u32 %s1552_s13, 11  ;;  %v148_v0 = vlaneseq  ;;  %s1584_s25 = sld [smem:[#allocation2]] }
  0x1a   : > { %v153_v2 = vstv %s1192_s24  ;;  %s1586_s26 = sld [smem:[#allocation2 + $0x1]] }
  0x1b   : > { %v149_v1 = vshrl.u32 %v148_v0, 7  ;;  %v157_v5 = vand.u32 127, %v148_v0  ;;  %s1588_s27 = sld [smem:[#allocation2 + $0x2]] }
  0x1c   : > { %s1590_s28 = sld [smem:[#allocation2 + $0x3]] }
  0x1d   : > { %v150_v3 = vadd.s32 8, %v149_v1  ;;  %v151_v4 = vmul.u32 128, %v149_v1  ;;  %s1592_s29 = sld [smem:[#allocation2 + $0x4]] }
  0x1e   : > { %s1594_s30 = sld [smem:[#allocation2 + $0x5]] }
  0x1f   : > { %v152_v6 = vmul.u32 128, %v150_v3  ;;  %v154_v7 = vadd.s32 %v153_v2, %v151_v4  ;;  %s1596_s3 = sld [smem:[#allocation2 + $0x6]]  ;;  %v169_v13 = vstv %s1584_s25 }
  0x20   : > { %s1598_s4 = sld [smem:[#allocation2 + $0x7]]  ;;  %v173_v14 = vstv %s1586_s26 }
  0x21   : > { %v155_v8 = vadd.s32 %v153_v2, %v152_v6  ;;  %v158_v9 = vadd.s32 %v157_v5, %v154_v7  ;;  %s1602_s5 = sld [smem:[#allocation2 + $0x8]]  ;;  %v179_v25 = vstv %s1588_s27 }
  0x22   : > { %s1608_s6 = sld [smem:[#allocation2 + $0x9]]  ;;  %v183_v19 = vstv %s1590_s28 }
  0x23   : > { %v159_v10 = vadd.s32 %v157_v5, %v155_v8  ;;  %v160_v11 = vshra.s32 %v158_v9, 6  ;;  %v162_v12 = vand.u32 63, %v158_v9  ;;  %v187_v20 = vstv %s1592_s29  ;;  %s1612_s7 = sld [smem:[#allocation2 + $0xa]] }
  0x24   : > { %s1620_s8 = sld [smem:[#allocation2 + $0xb]]  ;;  %v193_v28 = vstv %s1594_s30 }
  0x25   : > { %v161_v15 = vshra.s32 %v159_v10, 6  ;;  %v163_v16 = vand.u32 63, %v159_v10  ;;  %v1604_v17 = vcvt.s32.f32 %v162_v12  ;;  %v1606_v18 = vcvt.s32.f32 %v160_v11  ;;  %s1629_s14 = sld [smem:[#allocation2 + $0xc]] }
  0x26   : > { %v198_v35 = vstv %s1598_s4  ;;  %s1633_s16 = sld [smem:[#allocation2 + $0xd]]  ;;  %v201_v38 = vstv %s1596_s3 }
  0x27   : > { %v1614_v21 = vcvt.s32.f32 %v163_v16  ;;  %v1616_v22 = vcvt.s32.f32 %v161_v15  ;;  %v170_v23 = vmul.f32 %v169_v13, %v1604_v17  ;;  %v174_v24 = vmul.f32 %v173_v14, %v1606_v18  ;;  %s1639_s17 = sld [smem:[#allocation2 + $0xe]] }
  0x28   : > { %v184_v26 = vmul.f32 %v183_v19, %v1604_v17  ;;  %v188_v27 = vmul.f32 %v187_v20, %v1606_v18  ;;  %v205_v39 = vstv %s1602_s5  ;;  %v229_v43 = vstv %s1608_s6  ;;  %s1645_s21 = sld [smem:[#allocation2 + $0xf]] }
  0x29   : > { %v171_v29 = vmul.f32 %v169_v13, %v1614_v21  ;;  %v175_v30 = vmul.f32 %v173_v14, %v1616_v22  ;;  %v176_v31 = vadd.f32 %v174_v24, %v170_v23  ;;  %v185_v32 = vmul.f32 %v183_v19, %v1614_v21  ;;  %s1650_s22 = sld [smem:[#allocation2 + $0x10]] }
  0x2a   : > { %v189_v33 = vmul.f32 %v187_v20, %v1616_v22  ;;  %v190_v34 = vadd.f32 %v188_v27, %v184_v26  ;;  %v226_v42 = vstv %s1612_s7  ;;  %v233_v47 = vstv %s1620_s8  ;;  %s1657_s23 = sld [smem:[#allocation2 + $0x11]] }
  0x2b   : > { %v177_v36 = vadd.f32 %v175_v30, %v171_v29  ;;  %v1635_v37 = vadd.f32 %v179_v25, %v176_v31  ;;  %s1659_s24 = sld [smem:[#allocation2 + $0x12]]  ;;  %v243_v3 = vstv %s1629_s14 }
  0x2c   : > { %v191_v40 = vadd.f32 %v189_v33, %v185_v32  ;;  %v1641_v41 = vadd.f32 %v193_v28, %v190_v34  ;;  %s1661_s25 = sld [smem:[#allocation2 + $0x13]]  ;;  %v240_v2 = vstv %s1633_s16 }
  0x2d   : > { %v181_v44 = vadd.f32 %v179_v25, %v177_v36  ;;  %v199_v45 = vmul.f32 %v198_v35, %v1635_v37  ;;  %v227_v46 = vmul.f32 %v226_v42, %v1635_v37  ;;  %s1663_s26 = sld [smem:[#allocation2 + $0x14]]  ;;  %v241_v7 = vmul.f32 %v240_v2, %v1635_v37 }
  0x2e   : > { %v195_v48 = vadd.f32 %v193_v28, %v191_v40  ;;  %v206_v49 = vmul.f32 %v205_v39, %v1641_v41  ;;  %v210_v50 = vmin.f32 %v1635_v37, %v1641_v41  ;;  %v214_v51 = vadd.f32 %v1641_v41, %v1635_v37  ;;  %s1666_s27 = sld [smem:[#allocation2 + $0x15]] }
  0x2f   : > { %v200_v52 = vmul.f32 %v198_v35, %v181_v44  ;;  %v202_v53 = vadd.f32 %v201_v38, %v199_v45  ;;  %v228_v54 = vmul.f32 %v226_v42, %v181_v44  ;;  %v230_v55 = vadd.f32 %v229_v43, %v227_v46  ;;  %s1674_s28 = sld [smem:[#allocation2 + $0x16]] }
  0x30   : > { %v207_v56 = vmul.f32 %v205_v39, %v195_v48  ;;  %v211_v57 = vmin.f32 %v181_v44, %v195_v48  ;;  %vm212_vm0 = vcmp.ge.f32.partialorder %v210_v50, 0.0  ;;  %v215_v58 = vadd.f32 %v195_v48, %v181_v44  ;;  %s1685_s29 = sld [smem:[#allocation2 + $0x17]] }
  0x31   : > { %v203_v59 = vadd.f32 %v201_v38, %v200_v52  ;;  %v208_v60 = vadd.f32 %v206_v49, %v202_v53  ;;  %vm216_vm1 = vcmp.le.f32.partialorder %v214_v51, 1.0  ;;  %v231_v61 = vadd.f32 %v229_v43, %v228_v54  ;;  %s1690_s30 = sld [smem:[#allocation2 + $0x18]] }
  0x32   : > { %vm213_vm2 = vcmp.ge.f32.partialorder %v211_v57, 0.0  ;;  %vm217_vm3 = vcmp.le.f32.partialorder %v215_v58, 1.0  ;;  %vm218_vm4 = vmand %vm212_vm0, %vm216_vm1  ;;  %v234_v62 = vmul.f32 %v233_v47, %v1641_v41  ;;  %v235_v63 = vmul.f32 %v233_v47, %v195_v48  ;;  %s1699_s3 = sld [smem:[#allocation2 + $0x19]] }
  0x33   : > { %v209_v0 = vadd.f32 %v207_v56, %v203_v59  ;;  %vm1668_vm5 = vmand %vm213_vm2, %vm217_vm3  ;;  %vm220_vm6 = vcmp.lt.f32.partialorder %v208_v60, inf  ;;  %v242_v8 = vmul.f32 %v240_v2, %v181_v44  ;;  %v247_v9 = vstv %s1639_s17  ;;  %s1707_s4 = sld [smem:[#allocation2 + $0x1a]] }
  0x34   : > { %vm1676_vm7 = vmand %vm218_vm4, %vm220_vm6  ;;  %v1680_v5 = vadd.f32 %v234_v62, %v230_v55  ;;  %v1682_v6 = vadd.f32 %v235_v63, %v231_v61  ;;  %v254_v10 = vstv %s1650_s22  ;;  %v257_v11 = vstv %s1645_s21  ;;  %s1714_s5 = sld [smem:[#allocation2 + $0x1b]] }
  0x35   : > { %vm221_vm8 = vcmp.lt.f32.partialorder %v209_v0, inf  ;;  %v244_v13 = vadd.f32 %v243_v3, %v241_v7  ;;  %v245_v14 = vadd.f32 %v243_v3, %v242_v8  ;;  %v248_v15 = vmul.f32 %v247_v9, %v1641_v41  ;;  %s1723_s6 = sld [smem:[#allocation2 + $0x1c]] }
  0x36   : > { %vm1694_vm9 = vmand %vm1668_vm5, %vm221_vm8  ;;  %v249_v16 = vmul.f32 %v247_v9, %v195_v48  ;;  %v255_v19 = vmul.f32 %v254_v10, %v1635_v37  ;;  %v256_v20 = vmul.f32 %v254_v10, %v181_v44  ;;  %v261_v23 = vstv %s1657_s23  ;;  %s1735_s7 = sld [smem:[#allocation2 + $0x1d]] }
  0x37   : > { %v1705_v24 = vsel %vm1676_vm7, %v208_v60, inf  ;;  %v1709_v25 = vadd.f32 %v248_v15, %v244_v13  ;;  %v262_v27 = vmul.f32 %v261_v23, %v1641_v41  ;;  %v263_v28 = vmul.f32 %v261_v23, %v195_v48  ;;  %s1743_s8 = sld [smem:[#allocation2 + $0x1f]] }
  0x38   : > { %v1711_v26 = vadd.f32 %v249_v16, %v245_v14  ;;  %v258_v29 = vadd.f32 %v257_v11, %v255_v19  ;;  %v259_v30 = vadd.f32 %v257_v11, %v256_v20  ;;  %v1718_v31 = vsel %vm1694_vm9, %v209_v0, inf  ;;  %s1761_s14 = sld [smem:[#allocation2 + $0x1e]] }
  0x39   : > { %v268_v32 = vsel %vm1676_vm7, %v1680_v5, 1.0  ;;  %v269_v33 = vsel %vm1694_vm9, %v1682_v6, 1.0  ;;  %v270_v34 = vsel %vm1676_vm7, %v1709_v25, 1.0  ;;  %v275_v36 = vstv %s1659_s24  ;;  %s1765_s16 = sld [smem:[#allocation2 + $0x20]] }
  0x3a   : > { %v271_v35 = vsel %vm1694_vm9, %v1711_v26, 1.0  ;;  %v1737_v37 = vadd.f32 %v262_v27, %v258_v29  ;;  %v1739_v38 = vadd.f32 %v263_v28, %v259_v30  ;;  %v276_v39 = vmul.f32 %v275_v36, %v1604_v17  ;;  %s1769_s17 = sld [smem:[#allocation2 + $0x21]] }
  0x3b   : > { %v277_v40 = vmul.f32 %v275_v36, %v1614_v21  ;;  %v279_v41 = vstv %s1661_s25  ;;  %v285_v42 = vstv %s1663_s26  ;;  %v289_v43 = vstv %s1666_s27  ;;  %s1773_s21 = sld [smem:[#allocation2 + $0x22]] }
  0x3c   : > { %v293_v44 = vstv %s1674_s28  ;;  %v272_v45 = vsel %vm1676_vm7, %v1737_v37, 1.0  ;;  %v273_v46 = vsel %vm1694_vm9, %v1739_v38, 1.0  ;;  %v280_v47 = vmul.f32 %v279_v41, %v1606_v18  ;;  %s1777_s22 = sld [smem:[#allocation2 + $0x23]] }
  0x3d   : > { %v281_v48 = vmul.f32 %v279_v41, %v1616_v22  ;;  %v290_v49 = vmul.f32 %v289_v43, %v1604_v17  ;;  %v291_v50 = vmul.f32 %v289_v43, %v1614_v21  ;;  %v294_v51 = vmul.f32 %v293_v44, %v1606_v18  ;;  %s1779_s23 = sld [smem:[#allocation2 + $0x24]] }
  0x3e   : > { %v295_v52 = vmul.f32 %v293_v44, %v1616_v22  ;;  %v282_v53 = vadd.f32 %v280_v47, %v276_v39  ;;  %v299_v55 = vstv %s1685_s29  ;;  %v304_v56 = vstv %s1699_s3  ;;  %s1781_s24 = sld [smem:[#allocation2 + $0x25]] }
  0x3f   : > { %v283_v54 = vadd.f32 %v281_v48, %v277_v40  ;;  %v296_v57 = vadd.f32 %v294_v51, %v290_v49  ;;  %v307_v59 = vstv %s1690_s30  ;;  %v311_v60 = vstv %s1707_s4  ;;  %s1783_s25 = sld [smem:[#allocation2 + $0x26]] }
  0x40   : > { %v297_v58 = vadd.f32 %v295_v52, %v291_v50  ;;  %v286_v61 = vadd.f32 %v285_v42, %v282_v53  ;;  %v332_v63 = vstv %s1723_s6  ;;  %v335_v0 = vstv %s1714_s5  ;;  %s1789_s26 = sld [smem:[#allocation2 + $0x27]] }
  0x41   : > { %v287_v62 = vadd.f32 %v285_v42, %v283_v54  ;;  %v300_v1 = vadd.f32 %v299_v55, %v296_v57  ;;  %v339_v3 = vstv %s1735_s7  ;;  %v346_v7 = vstv %s1743_s8  ;;  %s1791_s27 = sld [smem:[#allocation2 + $0x28]]  ;;  %s1870_s8 = sand.u32 1, %s1494_s10  }
  0x42   : > { %v301_v2 = vadd.f32 %v299_v55, %v297_v58  ;;  %v305_v8 = vmul.f32 %v304_v56, %v286_v61  ;;  %v333_v10 = vmul.f32 %v332_v63, %v286_v61  ;;  %v347_v42 = vmul.f32 %v346_v7, %v286_v61  ;;  %s1793_s28 = sld [smem:[#allocation2 + $0x29]] }
  0x43   : > { %v306_v9 = vmul.f32 %v304_v56, %v287_v62  ;;  %v334_v11 = vmul.f32 %v332_v63, %v287_v62  ;;  %v312_v13 = vmul.f32 %v311_v60, %v300_v1  ;;  %v316_v15 = vmin.f32 %v286_v61, %v300_v1  ;;  %s1801_s29 = sld [smem:[#allocation2 + $0x2a]] }
  0x44   : > { %v313_v14 = vmul.f32 %v311_v60, %v301_v2  ;;  %v317_v16 = vmin.f32 %v287_v62, %v301_v2  ;;  %v308_v19 = vadd.f32 %v307_v59, %v305_v8  ;;  %v320_v23 = vadd.f32 %v300_v1, %v286_v61  ;;  %s1807_s30 = sld [smem:[#allocation2 + $0x2b]] }
  0x45   : > { %v309_v20 = vadd.f32 %v307_v59, %v306_v9  ;;  %v321_v27 = vadd.f32 %v301_v2, %v287_v62  ;;  %vm318_vm10 = vcmp.ge.f32.partialorder %v316_v15, 0.0  ;;  %v336_v29 = vadd.f32 %v335_v0, %v333_v10  ;;  %s1815_s3 = sld [smem:[#allocation2 + $0x2c]] }
  0x46   : > { %vm1785_vm11 = vcmp.ge.f32.partialorder %v317_v16, 0.0  ;;  %v337_v30 = vadd.f32 %v335_v0, %v334_v11  ;;  %v314_v36 = vadd.f32 %v312_v13, %v308_v19  ;;  %vm322_vm12 = vcmp.le.f32.partialorder %v320_v23, 1.0  ;;  %s1823_s4 = sld [smem:[#allocation2 + $0x2d]] }
  0x47   : > { %v315_v39 = vadd.f32 %v313_v14, %v309_v20  ;;  %vm323_vm13 = vcmp.le.f32.partialorder %v321_v27, 1.0  ;;  %vm324_vm14 = vmand %vm318_vm10, %vm322_vm12  ;;  %v340_v40 = vmul.f32 %v339_v3, %v300_v1  ;;  %v341_v41 = vmul.f32 %v339_v3, %v301_v2  ;;  %s1825_s5 = sld [smem:[#allocation2 + $0x2e]] }
  0x48   : > { %v348_v43 = vmul.f32 %v346_v7, %v287_v62  ;;  %vm325_vm15 = vmand %vm1785_vm11, %vm323_vm13  ;;  %vm326_vm0 = vcmp.lt.f32.partialorder %v314_v36, %v1705_v24  ;;  %v349_v44 = vstv %s1761_s14  ;;  %v353_v47 = vstv %s1765_s16  ;;  %s1840_s6 = sld [smem:[#allocation2 + $0x2f]] }
  0x49   : > { %vm327_vm1 = vcmp.lt.f32.partialorder %v315_v39, %v1718_v31  ;;  %vm1803_vm2 = vmand %vm324_vm14, %vm326_vm0  ;;  %v342_v49 = vadd.f32 %v340_v40, %v336_v29  ;;  %v343_v50 = vadd.f32 %v341_v41, %v337_v30  ;;  %v350_v51 = vadd.f32 %v349_v44, %v347_v42  ;;  %s1867_s7 = sld [smem:[#allocation2 + $0x31]] }
  0x4a   : > { %v351_v52 = vadd.f32 %v349_v44, %v348_v43  ;;  %vm1809_vm3 = vmand %vm325_vm15, %vm327_vm1  ;;  %v354_v54 = vmul.f32 %v353_v47, %v300_v1  ;;  %v355_v55 = vmul.f32 %v353_v47, %v301_v2  ;;  %v360_v56 = vstv %s1773_s21  ;;  %s1900_s14 = sld [smem:[#allocation2 + $0x30]] }
  0x4b   : > { %v363_v57 = vstv %s1769_s17  ;;  %v361_v58 = vmul.f32 %v360_v56, %v286_v61  ;;  %v362_v59 = vmul.f32 %v360_v56, %v287_v62  ;;  %v367_v60 = vstv %s1777_s22  ;;  %s1904_s16 = sld [smem:[#allocation2 + $0x32]] }
  0x4c   : > { %v1821_v63 = vsel %vm1803_vm2, %v314_v36, %v1705_v24  ;;  %v356_v0 = vadd.f32 %v354_v54, %v350_v51  ;;  %v357_v3 = vadd.f32 %v355_v55, %v351_v52  ;;  %v368_v7 = vmul.f32 %v367_v60, %v300_v1  ;;  %s1908_s17 = sld [smem:[#allocation2 + $0x33]] }
  0x4d   : > { %v369_v8 = vmul.f32 %v367_v60, %v301_v2  ;;  %v364_v9 = vadd.f32 %v363_v57, %v361_v58  ;;  %v365_v61 = vadd.f32 %v363_v57, %v362_v59  ;;  %v1830_v62 = vsel %vm1809_vm3, %v315_v39, %v1718_v31  ;;  %s1912_s21 = sld [smem:[#allocation2 + $0x34]] }
  0x4e   : > { %v1838_v24 = vsel %vm1803_vm2, %v342_v49, %v268_v32  ;;  %v1848_v1 = vsel %vm1809_vm3, %v343_v50, %v269_v33  ;;  %v1856_v5 = vsel %vm1803_vm2, %v356_v0, %v270_v34  ;;  %v1864_v31 = vsel %vm1809_vm3, %v357_v3, %v271_v35  ;;  %s1916_s22 = sld [smem:[#allocation2 + $0x35]] }
  0x4f   : > { %v381_v6 = vstv %s1779_s23  ;;  %v370_v32 = vadd.f32 %v368_v7, %v364_v9  ;;  %v371_v33 = vadd.f32 %v369_v8, %v365_v61  ;;  %v385_v2 = vstv %s1781_s24  ;;  %s1918_s23 = sld [smem:[#allocation2 + $0x36]] }
  0x50   : > { %v382_v25 = vmul.f32 %v381_v6, %v1604_v17  ;;  %v383_v34 = vmul.f32 %v381_v6, %v1614_v21  ;;  %v391_v10 = vstv %s1783_s25  ;;  %v395_v26 = vstv %s1789_s26  ;;  %s1920_s24 = sld [smem:[#allocation2 + $0x37]] }
  0x51   : > { %v399_v11 = vstv %s1791_s27  ;;  %v1884_v35 = vsel %vm1803_vm2, %v370_v32, %v272_v45  ;;  %v1892_v13 = vsel %vm1809_vm3, %v371_v33, %v273_v46  ;;  %v386_v14 = vmul.f32 %v385_v2, %v1606_v18  ;;  %s1922_s25 = sld [smem:[#allocation2 + $0x38]] }
  0x52   : > { %v387_v4 = vmul.f32 %v385_v2, %v1616_v22  ;;  %v396_v37 = vmul.f32 %v395_v26, %v1604_v17  ;;  %v397_v15 = vmul.f32 %v395_v26, %v1614_v21  ;;  %v400_v45 = vmul.f32 %v399_v11, %v1606_v18  ;;  %s1928_s26 = sld [smem:[#allocation2 + $0x39]] }
  0x53   : > { %v401_v12 = vmul.f32 %v399_v11, %v1616_v22  ;;  %v388_v38 = vadd.f32 %v386_v14, %v382_v25  ;;  %v405_v16 = vstv %s1793_s28  ;;  %v410_v19 = vstv %s1807_s30  ;;  %s1930_s27 = sld [smem:[#allocation2 + $0x3a]] }
  0x54   : > { %v389_v46 = vadd.f32 %v387_v4, %v383_v34  ;;  %v402_v20 = vadd.f32 %v400_v45, %v396_v37  ;;  %v413_v27 = vstv %s1801_s29  ;;  %v417_v28 = vstv %s1815_s3  ;;  %s1932_s28 = sld [smem:[#allocation2 + $0x3b]] }
  0x55   : > { %v403_v23 = vadd.f32 %v401_v12, %v397_v15  ;;  %v392_v29 = vadd.f32 %v391_v10, %v388_v38  ;;  %v438_v36 = vstv %s1825_s5  ;;  %v441_v39 = vstv %s1823_s4  ;;  %s1940_s29 = sld [smem:[#allocation2 + $0x3c]] }
  0x56   : > { %v393_v30 = vadd.f32 %v391_v10, %v389_v46  ;;  %v406_v40 = vadd.f32 %v405_v16, %v402_v20  ;;  %v445_v42 = vstv %s1840_s6  ;;  %v452_v43 = vstv %s1867_s7  ;;  %s1950_s30 = sld [smem:[#allocation2 + $0x3d]] }
  0x57   : > { %v407_v41 = vadd.f32 %v405_v16, %v403_v23  ;;  %v411_v44 = vmul.f32 %v410_v19, %v392_v29  ;;  %v439_v48 = vmul.f32 %v438_v36, %v392_v29  ;;  %v453_v9 = vmul.f32 %v452_v43, %v392_v29  ;;  %s1958_s3 = sld [smem:[#allocation2 + $0x3e]] }
  0x58   : > { %v412_v47 = vmul.f32 %v410_v19, %v393_v30  ;;  %v440_v49 = vmul.f32 %v438_v36, %v393_v30  ;;  %v418_v50 = vmul.f32 %v417_v28, %v406_v40  ;;  %v422_v52 = vmin.f32 %v392_v29, %v406_v40  ;;  %s1966_s4 = sld [smem:[#allocation2 + $0x3f]] }
  0x59   : > { %v419_v51 = vmul.f32 %v417_v28, %v407_v41  ;;  %v423_v53 = vmin.f32 %v393_v30, %v407_v41  ;;  %v414_v54 = vadd.f32 %v413_v27, %v411_v44  ;;  %v426_v56 = vadd.f32 %v406_v40, %v392_v29  ;;  %s1972_s5 = sld [smem:[#allocation2 + $0x40]] }
  0x5a   : > { %v415_v55 = vadd.f32 %v413_v27, %v412_v47  ;;  %v427_v57 = vadd.f32 %v407_v41, %v393_v30  ;;  %vm424_vm4 = vcmp.ge.f32.partialorder %v422_v52, 0.0  ;;  %v442_v59 = vadd.f32 %v441_v39, %v439_v48  ;;  %s1983_s6 = sld [smem:[#allocation2 + $0x41]] }
  0x5b   : > { %vm1924_vm5 = vcmp.ge.f32.partialorder %v423_v53, 0.0  ;;  %v443_v60 = vadd.f32 %v441_v39, %v440_v49  ;;  %v420_v0 = vadd.f32 %v418_v50, %v414_v54  ;;  %vm428_vm6 = vcmp.le.f32.partialorder %v426_v56, 1.0  ;;  %s1998_s7 = sld [smem:[#allocation2 + $0x43]] }
  0x5c   : > { %v421_v3 = vadd.f32 %v419_v51, %v415_v55  ;;  %vm429_vm7 = vcmp.le.f32.partialorder %v427_v57, 1.0  ;;  %vm430_vm8 = vmand %vm424_vm4, %vm428_vm6  ;;  %v446_v7 = vmul.f32 %v445_v42, %v406_v40  ;;  %v447_v8 = vmul.f32 %v445_v42, %v407_v41 }
  0x5d   : > { %v454_v61 = vmul.f32 %v452_v43, %v393_v30  ;;  %vm431_vm9 = vmand %vm1924_vm5, %vm429_vm7  ;;  %vm432_vm10 = vcmp.lt.f32.partialorder %v420_v0, %v1821_v63  ;;  %v455_v6 = vstv %s1900_s14  ;;  %v459_v32 = vstv %s1904_s16  ;;  %s2024_s14 = sld [smem:[#allocation2 + $0x42]] }
  0x5e   : > { %vm433_vm11 = vcmp.lt.f32.partialorder %v421_v3, %v1830_v62  ;;  %vm1942_vm12 = vmand %vm430_vm8, %vm432_vm10  ;;  %v1946_v25 = vadd.f32 %v446_v7, %v442_v59  ;;  %v1948_v34 = vadd.f32 %v447_v8, %v443_v60  ;;  %v456_v2 = vadd.f32 %v455_v6, %v453_v9  ;;  %s2028_s16 = sld [smem:[#allocation2 + $0x44]] }
  0x5f   : > { %v457_v10 = vadd.f32 %v455_v6, %v454_v61  ;;  %vm1952_vm13 = vmand %vm431_vm9, %vm433_vm11  ;;  %v460_v11 = vmul.f32 %v459_v32, %v406_v40  ;;  %v461_v14 = vmul.f32 %v459_v32, %v407_v41  ;;  %v466_v4 = vstv %s1912_s21  ;;  %s2036_s21 = sld [smem:[#allocation2 + $0x46]] }
  0x60   : > { %v469_v37 = vstv %s1908_s17  ;;  %v467_v15 = vmul.f32 %v466_v4, %v392_v29  ;;  %v468_v45 = vmul.f32 %v466_v4, %v393_v30  ;;  %v473_v12 = vstv %s1916_s22  ;;  %s2032_s17 = sld [smem:[#allocation2 + $0x45]] }
  0x61   : > { %v1964_v38 = vsel %vm1942_vm12, %v420_v0, %v1821_v63  ;;  %v1968_v46 = vadd.f32 %v460_v11, %v456_v2  ;;  %v1970_v16 = vadd.f32 %v461_v14, %v457_v10  ;;  %v474_v19 = vmul.f32 %v473_v12, %v406_v40  ;;  %s2040_s22 = sld [smem:[#allocation2 + $0x47]] }
  0x62   : > { %v475_v20 = vmul.f32 %v473_v12, %v407_v41  ;;  %v470_v23 = vadd.f32 %v469_v37, %v467_v15  ;;  %v471_v27 = vadd.f32 %v469_v37, %v468_v45  ;;  %v1977_v63 = vsel %vm1952_vm13, %v421_v3, %v1830_v62 }
  0x63   : > { %v480_v28 = vsel %vm1942_vm12, %v1946_v25, %v1838_v24  ;;  %v481_v29 = vsel %vm1952_vm13, %v1948_v34, %v1848_v1  ;;  %v482_v30 = vsel %vm1942_vm12, %v1968_v46, %v1856_v5  ;;  %v483_v62 = vsel %vm1952_vm13, %v1970_v16, %v1864_v31 }
  0x64   : > { %v487_v36 = vstv %s1918_s23  ;;  %v2000_v39 = vadd.f32 %v474_v19, %v470_v23  ;;  %v2002_v40 = vadd.f32 %v475_v20, %v471_v27  ;;  %v491_v43 = vstv %s1920_s24  ;;  %s2042_s23 = sld [smem:[#allocation2 + $0x48]] }
  0x65   : > { %v488_v41 = vmul.f32 %v487_v36, %v1604_v17  ;;  %v489_v42 = vmul.f32 %v487_v36, %v1614_v21  ;;  %v497_v44 = vstv %s1922_s25  ;;  %v501_v47 = vstv %s1928_s26  ;;  %s2044_s24 = sld [smem:[#allocation2 + $0x49]] }
  0x66   : > { %v505_v48 = vstv %s1930_s27  ;;  %v484_v49 = vsel %vm1942_vm12, %v2000_v39, %v1884_v35  ;;  %v485_v50 = vsel %vm1952_vm13, %v2002_v40, %v1892_v13  ;;  %v492_v51 = vmul.f32 %v491_v43, %v1606_v18  ;;  %s2046_s25 = sld [smem:[#allocation2 + $0x4a]] }
  0x67   : > { %v493_v52 = vmul.f32 %v491_v43, %v1616_v22  ;;  %v502_v53 = vmul.f32 %v501_v47, %v1604_v17  ;;  %v503_v54 = vmul.f32 %v501_v47, %v1614_v21  ;;  %v506_v55 = vmul.f32 %v505_v48, %v1606_v18  ;;  %s2052_s26 = sld [smem:[#allocation2 + $0x4b]] }
  0x68   : > { %v507_v56 = vmul.f32 %v505_v48, %v1616_v22  ;;  %v494_v57 = vadd.f32 %v492_v51, %v488_v41  ;;  %v511_v59 = vstv %s1932_s28  ;;  %v516_v60 = vstv %s1950_s30  ;;  %s2054_s27 = sld [smem:[#allocation2 + $0x4c]] }
  0x69   : > { %v495_v58 = vadd.f32 %v493_v52, %v489_v42  ;;  %v508_v0 = vadd.f32 %v506_v55, %v502_v53  ;;  %v519_v7 = vstv %s1940_s29  ;;  %v523_v8 = vstv %s1958_s3  ;;  %s2056_s28 = sld [smem:[#allocation2 + $0x4d]] }
  0x6a   : > { %v509_v3 = vadd.f32 %v507_v56, %v503_v54  ;;  %v498_v9 = vadd.f32 %v497_v44, %v494_v57  ;;  %v544_v6 = vstv %s1972_s5  ;;  %v547_v32 = vstv %s1966_s4  ;;  %s2064_s29 = sld [smem:[#allocation2 + $0x4e]] }
  0x6b   : > { %v499_v61 = vadd.f32 %v497_v44, %v495_v58  ;;  %v512_v2 = vadd.f32 %v511_v59, %v508_v0  ;;  %v551_v11 = vstv %s1983_s6  ;;  %v558_v14 = vstv %s1998_s7  ;;  %s2070_s30 = sld [smem:[#allocation2 + $0x4f]] }
  0x6c   : > { %v513_v10 = vadd.f32 %v511_v59, %v509_v3  ;;  %v517_v4 = vmul.f32 %v516_v60, %v498_v9  ;;  %v545_v15 = vmul.f32 %v544_v6, %v498_v9  ;;  %v559_v54 = vmul.f32 %v558_v14, %v498_v9  ;;  %s2078_s3 = sld [smem:[#allocation2 + $0x50]] }
  0x6d   : > { %v518_v37 = vmul.f32 %v516_v60, %v499_v61  ;;  %v546_v45 = vmul.f32 %v544_v6, %v499_v61  ;;  %v524_v12 = vmul.f32 %v523_v8, %v512_v2  ;;  %v528_v20 = vmin.f32 %v498_v9, %v512_v2  ;;  %s2086_s4 = sld [smem:[#allocation2 + $0x51]] }
  0x6e   : > { %v525_v19 = vmul.f32 %v523_v8, %v513_v10  ;;  %v529_v23 = vmin.f32 %v499_v61, %v513_v10  ;;  %v520_v27 = vadd.f32 %v519_v7, %v517_v4  ;;  %v532_v41 = vadd.f32 %v512_v2, %v498_v9  ;;  %s2088_s5 = sld [smem:[#allocation2 + $0x52]] }
  0x6f   : > { %v521_v36 = vadd.f32 %v519_v7, %v518_v37  ;;  %v533_v42 = vadd.f32 %v513_v10, %v499_v61  ;;  %vm530_vm14 = vcmp.ge.f32.partialorder %v528_v20, 0.0  ;;  %v548_v44 = vadd.f32 %v547_v32, %v545_v15  ;;  %s2104_s6 = sld [smem:[#allocation2 + $0x53]] }
  0x70   : > { %vm2048_vm15 = vcmp.ge.f32.partialorder %v529_v23, 0.0  ;;  %v549_v47 = vadd.f32 %v547_v32, %v546_v45  ;;  %v526_v48 = vadd.f32 %v524_v12, %v520_v27  ;;  %vm534_vm0 = vcmp.le.f32.partialorder %v532_v41, 1.0  ;;  %s2134_s7 = sld [smem:[#allocation2 + $0x55]] }
  0x71   : > { %v527_v51 = vadd.f32 %v525_v19, %v521_v36  ;;  %vm535_vm1 = vcmp.le.f32.partialorder %v533_v42, 1.0  ;;  %vm536_vm2 = vmand %vm530_vm14, %vm534_vm0  ;;  %v552_v52 = vmul.f32 %v551_v11, %v512_v2  ;;  %v553_v53 = vmul.f32 %v551_v11, %v513_v10 }
  0x72   : > { %v560_v55 = vmul.f32 %v558_v14, %v499_v61  ;;  %vm537_vm3 = vmand %vm2048_vm15, %vm535_vm1  ;;  %vm538_vm4 = vcmp.lt.f32.partialorder %v526_v48, %v1964_v38  ;;  %v561_v56 = vstv %s2024_s14  ;;  %v565_v57 = vstv %s2028_s16  ;;  %s2166_s14 = sld [smem:[#allocation2 + $0x54]] }
  0x73   : > { %vm539_vm5 = vcmp.lt.f32.partialorder %v527_v51, %v1977_v63  ;;  %vm2066_vm6 = vmand %vm536_vm2, %vm538_vm4  ;;  %v554_v59 = vadd.f32 %v552_v52, %v548_v44  ;;  %v555_v60 = vadd.f32 %v553_v53, %v549_v47  ;;  %v562_v0 = vadd.f32 %v561_v56, %v559_v54  ;;  %s2170_s16 = sld [smem:[#allocation2 + $0x56]] }
  0x74   : > { %v563_v3 = vadd.f32 %v561_v56, %v560_v55  ;;  %vm2072_vm7 = vmand %vm537_vm3, %vm539_vm5  ;;  %v566_v8 = vmul.f32 %v565_v57, %v512_v2  ;;  %v567_v6 = vmul.f32 %v565_v57, %v513_v10  ;;  %v572_v32 = vstv %s2036_s21  ;;  %s2178_s21 = sld [smem:[#allocation2 + $0x58]] }
  0x75   : > { %v575_v11 = vstv %s2032_s17  ;;  %v573_v14 = vmul.f32 %v572_v32, %v498_v9  ;;  %v574_v4 = vmul.f32 %v572_v32, %v499_v61  ;;  %v579_v37 = vstv %s2040_s22  ;;  %s2174_s17 = sld [smem:[#allocation2 + $0x57]] }
  0x76   : > { %v2084_v15 = vsel %vm2066_vm6, %v526_v48, %v1964_v38  ;;  %v568_v45 = vadd.f32 %v566_v8, %v562_v0  ;;  %v569_v12 = vadd.f32 %v567_v6, %v563_v3  ;;  %v580_v19 = vmul.f32 %v579_v37, %v512_v2  ;;  %s2182_s22 = sld [smem:[#allocation2 + $0x59]] }
  0x77   : > { %v581_v20 = vmul.f32 %v579_v37, %v513_v10  ;;  %v576_v23 = vadd.f32 %v575_v11, %v573_v14  ;;  %v577_v9 = vadd.f32 %v575_v11, %v574_v4  ;;  %v2093_v61 = vsel %vm2072_vm7, %v527_v51, %v1977_v63 }
  0x78   : > { %v2102_v38 = vsel %vm2066_vm6, %v554_v59, %v480_v28  ;;  %v2113_v63 = vsel %vm2072_vm7, %v555_v60, %v481_v29  ;;  %v2122_v24 = vsel %vm2066_vm6, %v568_v45, %v482_v30  ;;  %v2131_v1 = vsel %vm2072_vm7, %v569_v12, %v483_v62 }
  0x79   : > { %v593_v25 = vstv %s2042_s23  ;;  %v582_v34 = vadd.f32 %v580_v19, %v576_v23  ;;  %v583_v28 = vadd.f32 %v581_v20, %v577_v9  ;;  %v597_v29 = vstv %s2044_s24  ;;  %s2184_s23 = sld [smem:[#allocation2 + $0x5a]] }
  0x7a   : > { %v594_v5 = vmul.f32 %v593_v25, %v1604_v17  ;;  %v595_v46 = vmul.f32 %v593_v25, %v1614_v21  ;;  %v603_v30 = vstv %s2046_s25  ;;  %v607_v2 = vstv %s2052_s26  ;;  %s2186_s24 = sld [smem:[#allocation2 + $0x5b]] }
  0x7b   : > { %v611_v10 = vstv %s2054_s27  ;;  %v2149_v31 = vsel %vm2066_vm6, %v582_v34, %v484_v49  ;;  %v2158_v16 = vsel %vm2072_vm7, %v583_v28, %v485_v50  ;;  %v598_v33 = vmul.f32 %v597_v29, %v1606_v18  ;;  %s2188_s25 = sld [smem:[#allocation2 + $0x5c]] }
  0x7c   : > { %v599_v62 = vmul.f32 %v597_v29, %v1616_v22  ;;  %v608_v35 = vmul.f32 %v607_v2, %v1604_v17  ;;  %v609_v39 = vmul.f32 %v607_v2, %v1614_v21  ;;  %v612_v26 = vmul.f32 %v611_v10, %v1606_v18  ;;  %s2194_s26 = sld [smem:[#allocation2 + $0x5d]] }
  0x7d   : > { %v613_v13 = vmul.f32 %v611_v10, %v1616_v22  ;;  %v600_v40 = vadd.f32 %v598_v33, %v594_v5  ;;  %v617_v50 = vstv %s2056_s28  ;;  %v622_v27 = vstv %s2070_s30  ;;  %s2196_s27 = sld [smem:[#allocation2 + $0x5e]] }
  0x7e   : > { %v601_v49 = vadd.f32 %v599_v62, %v595_v46  ;;  %v614_v36 = vadd.f32 %v612_v26, %v608_v35  ;;  %v625_v42 = vstv %s2064_s29  ;;  %v629_v43 = vstv %s2078_s3  ;;  %s2198_s28 = sld [smem:[#allocation2 + $0x5f]] }
  0x7f   : > { %v615_v41 = vadd.f32 %v613_v13, %v609_v39  ;;  %v604_v44 = vadd.f32 %v603_v30, %v600_v40  ;;  %v650_v48 = vstv %s2088_s5  ;;  %v653_v51 = vstv %s2086_s4  ;;  %s2206_s29 = sld [smem:[#allocation2 + $0x60]] }
  0x80   : > { %v605_v47 = vadd.f32 %v603_v30, %v601_v49  ;;  %v618_v52 = vadd.f32 %v617_v50, %v614_v36  ;;  %v657_v54 = vstv %s2104_s6  ;;  %v664_v55 = vstv %s2134_s7  ;;  %s2216_s30 = sld [smem:[#allocation2 + $0x61]] }
  0x81   : > { %v619_v53 = vadd.f32 %v617_v50, %v615_v41  ;;  %v623_v56 = vmul.f32 %v622_v27, %v604_v44  ;;  %v651_v58 = vmul.f32 %v650_v48, %v604_v44  ;;  %v665_v23 = vmul.f32 %v664_v55, %v604_v44  ;;  %s2224_s3 = sld [smem:[#allocation2 + $0x62]] }
  0x82   : > { %v624_v57 = vmul.f32 %v622_v27, %v605_v47  ;;  %v652_v59 = vmul.f32 %v650_v48, %v605_v47  ;;  %v630_v60 = vmul.f32 %v629_v43, %v618_v52  ;;  %v634_v3 = vmin.f32 %v604_v44, %v618_v52  ;;  %s2232_s4 = sld [smem:[#allocation2 + $0x63]] }
  0x83   : > { %v631_v0 = vmul.f32 %v629_v43, %v619_v53  ;;  %v635_v7 = vmin.f32 %v605_v47, %v619_v53  ;;  %v626_v8 = vadd.f32 %v625_v42, %v623_v56  ;;  %v638_v32 = vadd.f32 %v618_v52, %v604_v44  ;;  %s2238_s5 = sld [smem:[#allocation2 + $0x64]] }
  0x84   : > { %v627_v6 = vadd.f32 %v625_v42, %v624_v57  ;;  %v639_v11 = vadd.f32 %v619_v53, %v605_v47  ;;  %vm636_vm8 = vcmp.ge.f32.partialorder %v634_v3, 0.0  ;;  %v654_v4 = vadd.f32 %v653_v51, %v651_v58  ;;  %s2249_s6 = sld [smem:[#allocation2 + $0x65]] }
  0x85   : > { %vm2190_vm9 = vcmp.ge.f32.partialorder %v635_v7, 0.0  ;;  %v655_v37 = vadd.f32 %v653_v51, %v652_v59  ;;  %v632_v45 = vadd.f32 %v630_v60, %v626_v8  ;;  %vm640_vm10 = vcmp.le.f32.partialorder %v638_v32, 1.0  ;;  %s2264_s7 = sld [smem:[#allocation2 + $0x67]] }
  0x86   : > { %v633_v12 = vadd.f32 %v631_v0, %v627_v6  ;;  %vm641_vm11 = vcmp.le.f32.partialorder %v639_v11, 1.0  ;;  %vm642_vm12 = vmand %vm636_vm8, %vm640_vm10  ;;  %v658_v19 = vmul.f32 %v657_v54, %v618_v52  ;;  %v659_v20 = vmul.f32 %v657_v54, %v619_v53 }
  0x87   : > { %v666_v9 = vmul.f32 %v664_v55, %v605_v47  ;;  %vm643_vm13 = vmand %vm2190_vm9, %vm641_vm11  ;;  %vm644_vm14 = vcmp.lt.f32.partialorder %v632_v45, %v2084_v15  ;;  %v667_v25 = vstv %s2166_s14  ;;  %v671_v34 = vstv %s2170_s16  ;;  %s2290_s14 = sld [smem:[#allocation2 + $0x66]] }
  0x88   : > { %vm645_vm15 = vcmp.lt.f32.partialorder %v633_v12, %v2093_v61  ;;  %vm2208_vm0 = vmand %vm642_vm12, %vm644_vm14  ;;  %v2212_v5 = vadd.f32 %v658_v19, %v654_v4  ;;  %v2214_v46 = vadd.f32 %v659_v20, %v655_v37  ;;  %v668_v29 = vadd.f32 %v667_v25, %v665_v23  ;;  %s2294_s16 = sld [smem:[#allocation2 + $0x68]] }
  0x89   : > { %v669_v30 = vadd.f32 %v667_v25, %v666_v9  ;;  %vm2218_vm1 = vmand %vm643_vm13, %vm645_vm15  ;;  %v672_v10 = vmul.f32 %v671_v34, %v618_v52  ;;  %v673_v33 = vmul.f32 %v671_v34, %v619_v53  ;;  %v678_v62 = vstv %s2178_s21  ;;  %s2302_s21 = sld [smem:[#allocation2 + $0x6a]] }
  0x8a   : > { %v681_v35 = vstv %s2174_s17  ;;  %v679_v39 = vmul.f32 %v678_v62, %v604_v44  ;;  %v680_v26 = vmul.f32 %v678_v62, %v605_v47  ;;  %v685_v13 = vstv %s2182_s22  ;;  %s2298_s17 = sld [smem:[#allocation2 + $0x69]] }
  0x8b   : > { %v2230_v40 = vsel %vm2208_vm0, %v632_v45, %v2084_v15  ;;  %v2234_v49 = vadd.f32 %v672_v10, %v668_v29  ;;  %v2236_v50 = vadd.f32 %v673_v33, %v669_v30  ;;  %v686_v27 = vmul.f32 %v685_v13, %v618_v52  ;;  %s2306_s22 = sld [smem:[#allocation2 + $0x6b]] }
  0x8c   : > { %v687_v36 = vmul.f32 %v685_v13, %v619_v53  ;;  %v682_v41 = vadd.f32 %v681_v35, %v679_v39  ;;  %v683_v42 = vadd.f32 %v681_v35, %v680_v26  ;;  %v2243_v15 = vsel %vm2218_vm1, %v633_v12, %v2093_v61 }
  0x8d   : > { %v692_v43 = vsel %vm2208_vm0, %v2212_v5, %v2102_v38  ;;  %v693_v44 = vsel %vm2218_vm1, %v2214_v46, %v2113_v63  ;;  %v694_v47 = vsel %vm2208_vm0, %v2234_v49, %v2122_v24  ;;  %v695_v61 = vsel %vm2218_vm1, %v2236_v50, %v2131_v1 }
  0x8e   : > { %v699_v48 = vstv %s2184_s23  ;;  %v2266_v51 = vadd.f32 %v686_v27, %v682_v41  ;;  %v2268_v52 = vadd.f32 %v687_v36, %v683_v42  ;;  %v703_v55 = vstv %s2186_s24  ;;  %s2308_s23 = sld [smem:[#allocation2 + $0x6c]] }
  0x8f   : > { %v700_v53 = vmul.f32 %v699_v48, %v1604_v17  ;;  %v701_v54 = vmul.f32 %v699_v48, %v1614_v21  ;;  %v709_v56 = vstv %s2188_s25  ;;  %v713_v57 = vstv %s2194_s26  ;;  %s2310_s24 = sld [smem:[#allocation2 + $0x6d]] }
  0x90   : > { %v717_v58 = vstv %s2196_s27  ;;  %v696_v59 = vsel %vm2208_vm0, %v2266_v51, %v2149_v31  ;;  %v697_v60 = vsel %vm2218_vm1, %v2268_v52, %v2158_v16  ;;  %v704_v0 = vmul.f32 %v703_v55, %v1606_v18  ;;  %s2312_s25 = sld [smem:[#allocation2 + $0x6e]] }
  0x91   : > { %v705_v3 = vmul.f32 %v703_v55, %v1616_v22  ;;  %v714_v7 = vmul.f32 %v713_v57, %v1604_v17  ;;  %v715_v8 = vmul.f32 %v713_v57, %v1614_v21  ;;  %v718_v6 = vmul.f32 %v717_v58, %v1606_v18  ;;  %s2318_s26 = sld [smem:[#allocation2 + $0x6f]] }
  0x92   : > { %v719_v32 = vmul.f32 %v717_v58, %v1616_v22  ;;  %v706_v11 = vadd.f32 %v704_v0, %v700_v53  ;;  %v723_v4 = vstv %s2198_s28  ;;  %v728_v37 = vstv %s2216_s30  ;;  %s2320_s27 = sld [smem:[#allocation2 + $0x70]] }
  0x93   : > { %v707_v14 = vadd.f32 %v705_v3, %v701_v54  ;;  %v720_v45 = vadd.f32 %v718_v6, %v714_v7  ;;  %v731_v19 = vstv %s2206_s29  ;;  %v735_v20 = vstv %s2224_s3  ;;  %s2322_s28 = sld [smem:[#allocation2 + $0x71]] }
  0x94   : > { %v721_v12 = vadd.f32 %v719_v32, %v715_v8  ;;  %v710_v23 = vadd.f32 %v709_v56, %v706_v11  ;;  %v756_v25 = vstv %s2238_s5  ;;  %v759_v34 = vstv %s2232_s4  ;;  %s2330_s29 = sld [smem:[#allocation2 + $0x72]] }
  0x95   : > { %v711_v9 = vadd.f32 %v709_v56, %v707_v14  ;;  %v724_v29 = vadd.f32 %v723_v4, %v720_v45  ;;  %v763_v10 = vstv %s2249_s6  ;;  %v770_v33 = vstv %s2264_s7  ;;  %s2336_s30 = sld [smem:[#allocation2 + $0x73]] }
  0x96   : > { %v725_v30 = vadd.f32 %v723_v4, %v721_v12  ;;  %v729_v62 = vmul.f32 %v728_v37, %v710_v23  ;;  %v757_v39 = vmul.f32 %v756_v25, %v710_v23  ;;  %v771_v8 = vmul.f32 %v770_v33, %v710_v23  ;;  %s2344_s3 = sld [smem:[#allocation2 + $0x74]] }
  0x97   : > { %v730_v35 = vmul.f32 %v728_v37, %v711_v9  ;;  %v758_v26 = vmul.f32 %v756_v25, %v711_v9  ;;  %v736_v13 = vmul.f32 %v735_v20, %v724_v29  ;;  %v740_v36 = vmin.f32 %v710_v23, %v724_v29  ;;  %s2352_s4 = sld [smem:[#allocation2 + $0x75]] }
  0x98   : > { %v737_v27 = vmul.f32 %v735_v20, %v725_v30  ;;  %v741_v41 = vmin.f32 %v711_v9, %v725_v30  ;;  %v732_v42 = vadd.f32 %v731_v19, %v729_v62  ;;  %v744_v53 = vadd.f32 %v724_v29, %v710_v23  ;;  %s2354_s5 = sld [smem:[#allocation2 + $0x76]] }
  0x99   : > { %v733_v48 = vadd.f32 %v731_v19, %v730_v35  ;;  %v745_v54 = vadd.f32 %v725_v30, %v711_v9  ;;  %vm742_vm2 = vcmp.ge.f32.partialorder %v740_v36, 0.0  ;;  %v760_v56 = vadd.f32 %v759_v34, %v757_v39  ;;  %s2370_s6 = sld [smem:[#allocation2 + $0x77]] }
  0x9a   : > { %vm2314_vm3 = vcmp.ge.f32.partialorder %v741_v41, 0.0  ;;  %v761_v57 = vadd.f32 %v759_v34, %v758_v26  ;;  %v738_v58 = vadd.f32 %v736_v13, %v732_v42  ;;  %vm746_vm4 = vcmp.le.f32.partialorder %v744_v53, 1.0  ;;  %s2400_s7 = sld [smem:[#allocation2 + $0x79]] }
  0x9b   : > { %v739_v0 = vadd.f32 %v737_v27, %v733_v48  ;;  %vm747_vm5 = vcmp.le.f32.partialorder %v745_v54, 1.0  ;;  %vm748_vm6 = vmand %vm742_vm2, %vm746_vm4  ;;  %v764_v3 = vmul.f32 %v763_v10, %v724_v29  ;;  %v765_v7 = vmul.f32 %v763_v10, %v725_v30 }
  0x9c   : > { %v772_v6 = vmul.f32 %v770_v33, %v711_v9  ;;  %vm749_vm7 = vmand %vm2314_vm3, %vm747_vm5  ;;  %vm750_vm8 = vcmp.lt.f32.partialorder %v738_v58, %v2230_v40  ;;  %v773_v32 = vstv %s2290_s14  ;;  %v777_v11 = vstv %s2294_s16  ;;  %s2432_s14 = sld [smem:[#allocation2 + $0x78]] }
  0x9d   : > { %vm751_vm9 = vcmp.lt.f32.partialorder %v739_v0, %v2243_v15  ;;  %vm2332_vm10 = vmand %vm748_vm6, %vm750_vm8  ;;  %v766_v4 = vadd.f32 %v764_v3, %v760_v56  ;;  %v767_v37 = vadd.f32 %v765_v7, %v761_v57  ;;  %v774_v45 = vadd.f32 %v773_v32, %v771_v8  ;;  %s2436_s16 = sld [smem:[#allocation2 + $0x7a]] }
  0x9e   : > { %v775_v12 = vadd.f32 %v773_v32, %v772_v6  ;;  %vm2338_vm11 = vmand %vm749_vm7, %vm751_vm9  ;;  %v778_v20 = vmul.f32 %v777_v11, %v724_v29  ;;  %v779_v25 = vmul.f32 %v777_v11, %v725_v30  ;;  %v784_v34 = vstv %s2302_s21  ;;  %s2444_s21 = sld [smem:[#allocation2 + $0x7c]] }
  0x9f   : > { %v787_v10 = vstv %s2298_s17  ;;  %v785_v33 = vmul.f32 %v784_v34, %v710_v23  ;;  %v786_v62 = vmul.f32 %v784_v34, %v711_v9  ;;  %v791_v35 = vstv %s2306_s22  ;;  %s2440_s17 = sld [smem:[#allocation2 + $0x7b]] }
  0xa0   : > { %v2350_v39 = vsel %vm2332_vm10, %v738_v58, %v2230_v40  ;;  %v780_v26 = vadd.f32 %v778_v20, %v774_v45  ;;  %v781_v13 = vadd.f32 %v779_v25, %v775_v12  ;;  %v792_v27 = vmul.f32 %v791_v35, %v724_v29  ;;  %s2448_s22 = sld [smem:[#allocation2 + $0x7d]] }
  0xa1   : > { %v793_v36 = vmul.f32 %v791_v35, %v725_v30  ;;  %v788_v41 = vadd.f32 %v787_v10, %v785_v33  ;;  %v789_v23 = vadd.f32 %v787_v10, %v786_v62  ;;  %v2359_v9 = vsel %vm2338_vm11, %v739_v0, %v2243_v15 }
  0xa2   : > { %v2368_v40 = vsel %vm2332_vm10, %v766_v4, %v692_v43  ;;  %v2379_v15 = vsel %vm2338_vm11, %v767_v37, %v693_v44  ;;  %v2388_v38 = vsel %vm2332_vm10, %v780_v26, %v694_v47  ;;  %v2397_v63 = vsel %vm2338_vm11, %v781_v13, %v695_v61 }
  0xa3   : > { %v805_v5 = vstv %s2308_s23  ;;  %v794_v46 = vadd.f32 %v792_v27, %v788_v41  ;;  %v795_v43 = vadd.f32 %v793_v36, %v789_v23  ;;  %v809_v44 = vstv %s2310_s24  ;;  %s2450_s23 = sld [smem:[#allocation2 + $0x7e]] }
  0xa4   : > { %v806_v24 = vmul.f32 %v805_v5, %v1604_v17  ;;  %v807_v49 = vmul.f32 %v805_v5, %v1614_v21  ;;  %v815_v47 = vstv %s2312_s25  ;;  %v819_v29 = vstv %s2318_s26  ;;  %s2452_s24 = sld [smem:[#allocation2 + $0x7f]] }
  0xa5   : > { %v823_v30 = vstv %s2320_s27  ;;  %v2415_v1 = vsel %vm2332_vm10, %v794_v46, %v696_v59  ;;  %v2424_v50 = vsel %vm2338_vm11, %v795_v43, %v697_v60  ;;  %v810_v28 = vmul.f32 %v809_v44, %v1606_v18  ;;  %s2454_s25 = sld [smem:[#allocation2 + $0x80]] }
  0xa6   : > { %v811_v61 = vmul.f32 %v809_v44, %v1616_v22  ;;  %v820_v31 = vmul.f32 %v819_v29, %v1604_v17  ;;  %v821_v51 = vmul.f32 %v819_v29, %v1614_v21  ;;  %v824_v2 = vmul.f32 %v823_v30, %v1606_v18  ;;  %s2460_s26 = sld [smem:[#allocation2 + $0x81]] }
  0xa7   : > { %v825_v16 = vmul.f32 %v823_v30, %v1616_v22  ;;  %v812_v52 = vadd.f32 %v810_v28, %v806_v24  ;;  %v829_v60 = vstv %s2322_s28  ;;  %v834_v42 = vstv %s2336_s30  ;;  %s2462_s27 = sld [smem:[#allocation2 + $0x82]] }
  0xa8   : > { %v813_v59 = vadd.f32 %v811_v61, %v807_v49  ;;  %v826_v48 = vadd.f32 %v824_v2, %v820_v31  ;;  %v837_v54 = vstv %s2330_s29  ;;  %v841_v55 = vstv %s2344_s3  ;;  %s2464_s28 = sld [smem:[#allocation2 + $0x83]] }
  0xa9   : > { %v827_v53 = vadd.f32 %v825_v16, %v821_v51  ;;  %v816_v56 = vadd.f32 %v815_v47, %v812_v52  ;;  %v862_v58 = vstv %s2354_s5  ;;  %v865_v0 = vstv %s2352_s4  ;;  %s2472_s29 = sld [smem:[#allocation2 + $0x84]] }
  0xaa   : > { %v817_v57 = vadd.f32 %v815_v47, %v813_v59  ;;  %v830_v3 = vadd.f32 %v829_v60, %v826_v48  ;;  %v869_v8 = vstv %s2370_s6  ;;  %v876_v6 = vstv %s2400_s7  ;;  %s2482_s30 = sld [smem:[#allocation2 + $0x85]] }
  0xab   : > { %v831_v7 = vadd.f32 %v829_v60, %v827_v53  ;;  %v835_v32 = vmul.f32 %v834_v42, %v816_v56  ;;  %v863_v14 = vmul.f32 %v862_v58, %v816_v56  ;;  %v877_v41 = vmul.f32 %v876_v6, %v816_v56  ;;  %s2490_s3 = sld [smem:[#allocation2 + $0x86]] }
  0xac   : > { %v836_v11 = vmul.f32 %v834_v42, %v817_v57  ;;  %v864_v4 = vmul.f32 %v862_v58, %v817_v57  ;;  %v842_v37 = vmul.f32 %v841_v55, %v830_v3  ;;  %v846_v12 = vmin.f32 %v816_v56, %v830_v3  ;;  %s2498_s4 = sld [smem:[#allocation2 + $0x87]] }
  0xad   : > { %v843_v45 = vmul.f32 %v841_v55, %v831_v7  ;;  %v847_v19 = vmin.f32 %v817_v57, %v831_v7  ;;  %v838_v20 = vadd.f32 %v837_v54, %v835_v32  ;;  %v850_v34 = vadd.f32 %v830_v3, %v816_v56  ;;  %s2504_s5 = sld [smem:[#allocation2 + $0x88]] }
  0xae   : > { %v839_v25 = vadd.f32 %v837_v54, %v836_v11  ;;  %v851_v10 = vadd.f32 %v831_v7, %v817_v57  ;;  %vm848_vm12 = vcmp.ge.f32.partialorder %v846_v12, 0.0  ;;  %v866_v62 = vadd.f32 %v865_v0, %v863_v14  ;;  %s2515_s6 = sld [smem:[#allocation2 + $0x89]] }
  0xaf   : > { %vm2456_vm13 = vcmp.ge.f32.partialorder %v847_v19, 0.0  ;;  %v867_v35 = vadd.f32 %v865_v0, %v864_v4  ;;  %v844_v26 = vadd.f32 %v842_v37, %v838_v20  ;;  %vm852_vm14 = vcmp.le.f32.partialorder %v850_v34, 1.0  ;;  %s2530_s7 = sld [smem:[#allocation2 + $0x8b]] }
  0xb0   : > { %v845_v13 = vadd.f32 %v843_v45, %v839_v25  ;;  %vm853_vm15 = vcmp.le.f32.partialorder %v851_v10, 1.0  ;;  %vm854_vm0 = vmand %vm848_vm12, %vm852_vm14  ;;  %v870_v27 = vmul.f32 %v869_v8, %v830_v3  ;;  %v871_v36 = vmul.f32 %v869_v8, %v831_v7 }
  0xb1   : > { %v878_v23 = vmul.f32 %v876_v6, %v817_v57  ;;  %vm855_vm1 = vmand %vm2456_vm13, %vm853_vm15  ;;  %vm856_vm2 = vcmp.lt.f32.partialorder %v844_v26, %v2350_v39  ;;  %v879_v5 = vstv %s2432_s14  ;;  %v883_v46 = vstv %s2436_s16  ;;  %s2560_s14 = sld [smem:[#allocation2 + $0x8a]] }
  0xb2   : > { %vm857_vm3 = vcmp.lt.f32.partialorder %v845_v13, %v2359_v9  ;;  %vm2474_vm4 = vmand %vm854_vm0, %vm856_vm2  ;;  %v2478_v24 = vadd.f32 %v870_v27, %v866_v62  ;;  %v2480_v49 = vadd.f32 %v871_v36, %v867_v35  ;;  %v880_v44 = vadd.f32 %v879_v5, %v877_v41  ;;  %s2564_s16 = sld [smem:[#allocation2 + $0x8c]] }
  0xb3   : > { %v881_v47 = vadd.f32 %v879_v5, %v878_v23  ;;  %vm2484_vm5 = vmand %vm855_vm1, %vm857_vm3  ;;  %v884_v30 = vmul.f32 %v883_v46, %v830_v3  ;;  %v885_v28 = vmul.f32 %v883_v46, %v831_v7  ;;  %v890_v61 = vstv %s2444_s21  ;;  %s2570_s21 = sld [smem:[#allocation2 + $0x8e]] }
  0xb4   : > { %v893_v31 = vstv %s2440_s17  ;;  %v891_v51 = vmul.f32 %v890_v61, %v816_v56  ;;  %v892_v2 = vmul.f32 %v890_v61, %v817_v57  ;;  %v897_v16 = vstv %s2448_s22  ;;  %s2568_s17 = sld [smem:[#allocation2 + $0x8d]] }
  0xb5   : > { %v2496_v52 = vsel %vm2474_vm4, %v844_v26, %v2350_v39  ;;  %v2500_v59 = vadd.f32 %v884_v30, %v880_v44  ;;  %v2502_v60 = vadd.f32 %v885_v28, %v881_v47  ;;  %v898_v42 = vmul.f32 %v897_v16, %v830_v3  ;;  %s2572_s22 = sld [smem:[#allocation2 + $0x8f]] }
  0xb6   : > { %v899_v48 = vmul.f32 %v897_v16, %v831_v7  ;;  %v894_v53 = vadd.f32 %v893_v31, %v891_v51  ;;  %v895_v54 = vadd.f32 %v893_v31, %v892_v2  ;;  %v2509_v39 = vsel %vm2484_vm5, %v845_v13, %v2359_v9 }
  0xb7   : > { %v904_v55 = vsel %vm2474_vm4, %v2478_v24, %v2368_v40  ;;  %v905_v56 = vsel %vm2484_vm5, %v2480_v49, %v2379_v15  ;;  %v906_v57 = vsel %vm2474_vm4, %v2500_v59, %v2388_v38  ;;  %v907_v9 = vsel %vm2484_vm5, %v2502_v60, %v2397_v63 }
  0xb8   : > { %v911_v58 = vstv %s2450_s23  ;;  %v2532_v0 = vadd.f32 %v898_v42, %v894_v53  ;;  %v2534_v3 = vadd.f32 %v899_v48, %v895_v54  ;;  %v915_v6 = vstv %s2452_s24  ;;  %s1190_s23 = sshll.u32 %s1870_s8, 6  ;;  %s1191_s24 = sshll.u32 %s1870_s8, 4 }
  0xb9   : > { %v912_v7 = vmul.f32 %v911_v58, %v1604_v17  ;;  %v913_v8 = vmul.f32 %v911_v58, %v1614_v21  ;;  %v921_v32 = vstv %s2454_s25  ;;  %v925_v11 = vstv %s2460_s26  ;;  %s137_s25 = scalar_lea.vmem [#allocation5], %s1190_s23  ;;  %s144_s26 = scalar_lea.vmem [#allocation6], %s1191_s24 }
  0xba   : > { %v929_v14 = vstv %s2462_s27  ;;  %v908_v4 = vsel %vm2474_vm4, %v2532_v0, %v2415_v1  ;;  %v909_v37 = vsel %vm2484_vm5, %v2534_v3, %v2424_v50  ;;  %v916_v45 = vmul.f32 %v915_v6, %v1606_v18  ;;  %s1034_s27 = scalar_lea.sflag [#allocation3], %s1870_s8 }
  0xbb   : > { %v917_v12 = vmul.f32 %v915_v6, %v1616_v22  ;;  %v926_v19 = vmul.f32 %v925_v11, %v1604_v17  ;;  %v927_v20 = vmul.f32 %v925_v11, %v1614_v21  ;;  %v930_v25 = vmul.f32 %v929_v14, %v1606_v18 }
  0xbc   : > { %v931_v34 = vmul.f32 %v929_v14, %v1616_v22  ;;  %v918_v10 = vadd.f32 %v916_v45, %v912_v7  ;;  %v935_v62 = vstv %s2464_s28  ;;  %v940_v35 = vstv %s2482_s30  ;;  %s1039_s28 = scalar_lea.sflag [#allocation7], %s1870_s8 }
  0xbd   : > { %v919_v33 = vadd.f32 %v917_v12, %v913_v8  ;;  %v932_v26 = vadd.f32 %v930_v25, %v926_v19  ;;  %v943_v27 = vstv %s2472_s29  ;;  %v947_v36 = vstv %s2490_s3 }
  0xbe   : > { %v933_v13 = vadd.f32 %v931_v34, %v927_v20  ;;  %v922_v17 = vadd.f32 %v921_v32, %v918_v10  ;;  %v968_v23 = vstv %s2504_s5  ;;  %v971_v21 = vstv %s2498_s4 }
  0xbf   : > { %v923_v41 = vadd.f32 %v921_v32, %v919_v33  ;;  %v936_v18 = vadd.f32 %v935_v62, %v932_v26  ;;  %v975_v5 = vstv %s2515_s6  ;;  %v982_v46 = vstv %s2530_s7 }
  0xc0   : > { %v937_v22 = vadd.f32 %v935_v62, %v933_v13  ;;  %v941_v44 = vmul.f32 %v940_v35, %v922_v17  ;;  %v969_v30 = vmul.f32 %v968_v23, %v922_v17  ;;  %v983_v11 = vmul.f32 %v982_v46, %v922_v17 }
  0xc1   : > { %v942_v47 = vmul.f32 %v940_v35, %v923_v41  ;;  %v970_v28 = vmul.f32 %v968_v23, %v923_v41  ;;  %v948_v61 = vmul.f32 %v947_v36, %v936_v18  ;;  %v952_v51 = vmin.f32 %v922_v17, %v936_v18 }
  0xc2   : > { %v949_v31 = vmul.f32 %v947_v36, %v937_v22  ;;  %v953_v2 = vmin.f32 %v923_v41, %v937_v22  ;;  %v944_v16 = vadd.f32 %v943_v27, %v941_v44  ;;  %v956_v48 = vadd.f32 %v936_v18, %v922_v17 }
  0xc3   : > { %v945_v42 = vadd.f32 %v943_v27, %v942_v47  ;;  %v957_v53 = vadd.f32 %v937_v22, %v923_v41  ;;  %vm954_vm6 = vcmp.ge.f32.partialorder %v952_v51, 0.0  ;;  %v972_v54 = vadd.f32 %v971_v21, %v969_v30 }
  0xc4   : > { %vm955_vm7 = vcmp.ge.f32.partialorder %v953_v2, 0.0  ;;  %v973_v58 = vadd.f32 %v971_v21, %v970_v28  ;;  %v950_v7 = vadd.f32 %v948_v61, %v944_v16  ;;  %vm958_vm8 = vcmp.le.f32.partialorder %v956_v48, 1.0 }
  0xc5   : > { %v951_v8 = vadd.f32 %v949_v31, %v945_v42  ;;  %vm959_vm9 = vcmp.le.f32.partialorder %v957_v53, 1.0  ;;  %vm960_vm10 = vmand %vm954_vm6, %vm958_vm8  ;;  %v976_v6 = vmul.f32 %v975_v5, %v936_v18  ;;  %v977_v32 = vmul.f32 %v975_v5, %v937_v22 }
  0xc6   : > { %v984_v14 = vmul.f32 %v982_v46, %v923_v41  ;;  %vm961_vm11 = vmand %vm955_vm7, %vm959_vm9  ;;  %vm962_vm12 = vcmp.lt.f32.partialorder %v950_v7, %v2496_v52  ;;  %v985_v45 = vstv %s2560_s14  ;;  %v989_v12 = vstv %s2564_s16 }
  0xc7   : > { %vm963_vm13 = vcmp.lt.f32.partialorder %v951_v8, %v2509_v39  ;;  %vm2579_vm14 = vmand %vm960_vm10, %vm962_vm12  ;;  %v978_v20 = vadd.f32 %v976_v6, %v972_v54  ;;  %v979_v25 = vadd.f32 %v977_v32, %v973_v58  ;;  %v986_v34 = vadd.f32 %v985_v45, %v983_v11 }
  0xc8   : > { %v987_v10 = vadd.f32 %v985_v45, %v984_v14  ;;  %vm2583_vm15 = vmand %vm961_vm11, %vm963_vm13  ;;  %v990_v62 = vmul.f32 %v989_v12, %v936_v18  ;;  %v991_v35 = vmul.f32 %v989_v12, %v937_v22  ;;  %v996_v26 = vstv %s2570_s21 }
  0xc9   : > { %v999_v13 = vstv %s2568_s17  ;;  %v997_v27 = vmul.f32 %v996_v26, %v922_v17  ;;  %v998_v36 = vmul.f32 %v996_v26, %v923_v41  ;;  %v1003_v23 = vstv %s2572_s22 }
  0xca   : > { %v1008_v21 = vsel %vm2579_vm14, %v950_v7, %v2496_v52  ;;  %v992_v5 = vadd.f32 %v990_v62, %v986_v34  ;;  %v993_v46 = vadd.f32 %v991_v35, %v987_v10  ;;  %v1004_v44 = vmul.f32 %v1003_v23, %v936_v18 }
  0xcb   : > { %v1005_v47 = vmul.f32 %v1003_v23, %v937_v22  ;;  %v1000_v30 = vadd.f32 %v999_v13, %v997_v27  ;;  %v1001_v28 = vadd.f32 %v999_v13, %v998_v36  ;;  %v1009_v61 = vsel %vm2583_vm15, %v951_v8, %v2509_v39 }
  0xcc   : > { %v1010_v17 = vsel %vm2579_vm14, %v978_v20, %v904_v55  ;;  %v1011_v52 = vsel %vm2583_vm15, %v979_v25, %v905_v56  ;;  %v1012_v39 = vsel %vm2579_vm14, %v992_v5, %v906_v57  ;;  %v1013_v40 = vsel %vm2583_vm15, %v993_v46, %v907_v9 }
  0xcd   : > { %1016 = vst [vmem:[%s137_s25] sm:$0xff] %v1010_v17  ;;  %v1006_v15 = vadd.f32 %v1004_v44, %v1000_v30  ;;  %v1007_v24 = vadd.f32 %v1005_v47, %v1001_v28  ;;  %1017 = vst [vmem:[%s137_s25 + $0x8] sm:$0xff] %v1011_v52  ;;  %v1505_v38 = vmov 1.0   ;;  %vm1027_vm0 = vcmp.lt.f32.partialorder %v1008_v21, 1e+30 }
  0xce   : > { %1336 = vst [vmem:[%s137_s25 + $0x10] sm:$0xff] %v1012_v39  ;;  %1337 = vst [vmem:[%s137_s25 + $0x18] sm:$0xff] %v1013_v40  ;;  %vm1028_vm1 = vcmp.lt.f32.partialorder %v1009_v61, 1e+30  ;;  %v1029_v63 = vsel %vm1027_vm0, %v1008_v21, -1.0 }
  0xcf   : > { %1340 = vst [vmem:[%s137_s25 + $0x30] sm:$0xff] %v1505_v38  ;;  %1341 = vst [vmem:[%s137_s25 + $0x38] sm:$0xff] %v1505_v38  ;;  %v1030_v49 = vsel %vm1028_vm1, %v1009_v61, -1.0  ;;  %v1014_v59 = vsel %vm2579_vm14, %v1006_v15, %v908_v4  ;;  %v1015_v60 = vsel %vm2583_vm15, %v1007_v24, %v909_v37 }
  0xd0   : > { %1031 = vst [vmem:[%s144_s26] sm:$0xff] %v1029_v63  ;;  %1032 = vst [vmem:[%s144_s26 + $0x8] sm:$0xff] %v1030_v49 }
  0xd1   : > { %1338 = vst [vmem:[%s137_s25 + $0x20] sm:$0xff] %v1014_v59  ;;  %1339 = vst [vmem:[%s137_s25 + $0x28] sm:$0xff] %v1015_v60 }
  0xd2   : > { %s1350_s29 = sshll.u32 %s1552_s13, 8  ;;  %s1062_s30 = sshll.u32 %s137_s25, 4  ;;  %s1063_s30 = int_to_ptr.vmem [resolvable:$true] %s1062_s30 }
  0xd3   : > { %s1051_s5 = scalar_lea.hbm %s2710_s1, %s1350_s29  ;;  %s1506_s6 = smov 256  }
  0xd4   : > { %1356 = sst [smem:[#allocation9]] (%p1569_p5), %s1506_s6  ;;  %s1507_s7 = smov 512  }
  0xd5   : > { %1357 = sst [smem:[#allocation9 + $0x1]] (%p1569_p5), %s1507_s7  ;;  %s1508_s14 = smov 2  }
  0xd6   : > { %1358 = sst [smem:[#allocation9 + $0x2]] (%p1569_p5), %s1508_s14  ;;  %s1509_s16 = smov 128  }
  0xd7   : > { %1359 = sst [smem:[#allocation9 + $0x3]] (%p1569_p5), %s1509_s16  ;;  %s1510_s13 = smov 8  }
  0xd8   : > { %1360 = sst [smem:[#allocation9 + $0x4]] (%p1569_p5), %s1509_s16  ;;  %s1511_s17 = smov 131072  }
  0xd9   : > { %1361 = sst [smem:[#allocation9 + $0x5]] (%p1569_p5), %s1510_s13  ;;  %s1512_s21 = smov 0  }
  0xda   : > { %1362 = dma.general (%p1569_p5), %s1063_s30, 1024, %s1051_s5, %s1034_s27, %s1511_s17, [#allocation9], %s1512_s21, 0  }
  0xdb   : > { %s2666_s24 = scalar_lea.hbm %s2711_s2, %s1350_s29  ;;  %s1091_s25 = sshll.u32 %s144_s26, 4  ;;  %s2668_s25 = int_to_ptr.vmem [resolvable:$true] %s1091_s25 }
  0xdc   : > { %s1434_s3 = scalar_lea.vmem %s2668_s25, 256  ;;  %s1513_s4 = smov [#allocation6]  }
  0xdd   : > { %p1435_p13 = scmp.ne.s32.totalorder %s2668_s25, %s1434_s3  ;;  %s1438_s6 = sshll.u32 %s1513_s4, 4  ;;  %s1439_s6 = int_to_ptr.vmem [resolvable:$false] %s1438_s6 }
  0xde   : > { %s1440_s27 = scalar_lea.vmem %s1439_s6, 512  ;;  %p1441_p2 = scmp.lt.s32.totalorder %s2668_s25, %s1439_s6 }
  0xdf   : > { %p1436_p0 = pnand %p1435_p13, %p1569_p5  ;;  %p1442_p3 = scmp.lt.s32.totalorder %s1440_s27, %s1434_s3 }
  0xe1   : > { %p1437_p1 = pneg %p1436_p0  ;;  %p1443_p4 = por %p1442_p3, %p1441_p2 }
  0xe3   : > { %p1444_p7 = pnand %p1443_p4, %p1437_p1 }
  0xe5   : > { %1447 = shalt.err (!%p1444_p7)
}
  0xe6   : > { %s1448_s26 = scalar_lea.hbm %s2666_s24, 256  ;;  %s1452_s5 = scalar_lea.hbm %s2711_s2, 512 }
  0xe7   : > { %p1449_p8 = scmp.ne.s32.totalorder %s2666_s24, %s1448_s26  ;;  %p1453_p11 = scmp.lt.s32.totalorder %s2666_s24, %s2711_s2 }
  0xe8   : > { %p1454_p12 = scmp.lt.s32.totalorder %s1452_s5, %s1448_s26 }
  0xe9   : > { %p1450_p9 = pnand %p1449_p8, %p1569_p5 }
  0xea   : > { %p1455_p13 = por %p1454_p12, %p1453_p11 }
  0xeb   : > { %p1451_p10 = pneg %p1450_p9 }
  0xed   : > { %p1456_p0 = pnand %p1455_p13, %p1451_p10 }
  0xef   : > { %1459 = shalt.err (!%p1456_p0)
}
  0xf0   : > { %s1514_s16 = smov 128   ;;  %s1515_s13 = smov 8  }
  0xf1   : > { %1363 = dma.vmem_to_hbm [thread:$0]  (%p1569_p5), %s2668_s25, 256, %s2666_s24, %s1039_s28, %s1514_s16, %s1514_s16, %s1515_s13  }
  0xf2 PF: > { %p1379_p1 = scmp.ge.s32.totalorder %s1502_s12, 2  ;;  %s1106_s17 = sand.u32 1, %s1490_s9  }
  0xf3   : > { %s1107_s21 = scalar_lea.sflag [#allocation3], %s1106_s17 }
  0xf4   : > { %p1371_p2 = pnand %p1379_p1, %p1573_p6 }
  0xf6   : > { %p1372_p3 = pneg %p1371_p2 }
  0xf8   : > { %1481 = dma.done.wait (%p1372_p3), %s1107_s21, 1024  }
  0xf9   : > { %1483 = vsyncadd (%p1372_p3), %s1107_s21, 4294966272  ;;  %s1116_s22 = scalar_lea.sflag [#allocation7], %s1106_s17 }
  0xfa   : > { %1485 = dma.done.wait (%p1372_p3), %s1116_s22, 256  }
  0xfb   : > { %1487 = vsyncadd (%p1372_p3), %s1116_s22, 4294967040  ;;  %p17_p5 = scmp.ge.s32.totalorder %s1556_s15, 4   ;;  %s2760_s9 = smov %s1494_s10 }
  0xfc   : > { %s2761_s10 = smov %s1498_s11  ;;  %s2762_s11 = smov %s1567_s18 }
  0xfd   : > { %s2763_s12 = smov %s1556_s15  ;;  %19 = sbr.rel (!%p17_p5) target bundleno = 6 (0x6), region = 86 }
 0x102   :  { %1121 = vsyncpa [#allocation3], 1 }
 0x103   :  { %1123 = vsyncpa [#allocation3 + $0x1], 1 }
 0x104   :  { %1124 = vsyncpa [#allocation7], 1 }
 0x105   :  { %1126 = vsyncpa [#allocation7 + $0x1], 1 }
 0x106   :  { %1127 = vsyncpa [#allocation4], 1 }
 0x107   :  { %1129 = vsyncpa [#allocation4 + $0x1], 1 }

</bundles_post_ra>
